<compile_context>
chip_gen: v7x
topology: tpu7x:2x2x1
jax: 0.10.0
libtpu: 0.0.40
codegen_flags: <defaults>
</compile_context>

<pallas_src>
import functools

import jax
import jax.numpy as jnp
import numpy as np
from jax.experimental import pallas as pl
from jax.experimental.pallas import tpu as pltpu

N_FILTER = 5      # conv output channels
HIDDEN = 50       # LSTM hidden size
HIDDEN_PAD = 128  # each LSTM gate padded to a full 128-lane vreg


# ----------------------------------------------------------------------------
# Fused kernel: (Conv1d k=3 pad=1 + ReLU + MaxPool1d(2) + Flatten) + LSTM + Linear
# ----------------------------------------------------------------------------
def cnnlstm_kernel(x_ref, we_ref, wo_ref, bconv_ref, wih_ref, whh_ref, bg_ref,
                   wlin_ref, blin_ref, out_ref):
    # x_ref     : (1, Np, S*C)  f32   Np = Bp*T rows, t-major / b-minor within block
    # we_ref    : (S*C, D)      bf16  banded conv+pool weights, even pooled positions
    # wo_ref    : (S*C, D)      bf16  banded conv+pool weights, odd pooled positions
    # bconv_ref : (1, D)        f32   conv bias tiled to (s2-major, f-minor) layout
    # wih_ref   : (D, 4*HP)     bf16  fused [i|f|g|o], gate blocks 128-aligned,
    #                                 i/f/o pre-scaled by 0.5, flatten perm folded in
    # whh_ref   : (HP, 4*HP)    bf16  rows >= H are zero
    # bg_ref    : (1, 4*HP)     f32   b_ih + b_hh, i/f/o pre-scaled by 0.5
    # wlin_ref  : (HP, NC)      bf16  rows >= H are zero
    # blin_ref  : (1, NC)       f32
    # out_ref   : (1, Bp, NC)   f32
    _, n_rows, _ = x_ref.shape
    hp = whh_ref.shape[0]
    _, bp, _ = out_ref.shape
    t_steps = n_rows // bp

    # ---- CNN stage: conv + ReLU + MaxPool + flatten as two dense matmuls + VPU max ----
    xb = x_ref[0].astype(jnp.bfloat16)                               # (Np, S*C)
    conv_e = jnp.dot(xb, we_ref[...], preferred_element_type=jnp.float32)
    conv_o = jnp.dot(xb, wo_ref[...], preferred_element_type=jnp.float32)
    feat = jnp.maximum(jnp.maximum(conv_e, conv_o) + bconv_ref[...], 0.0)   # (Np, D) f32

    # ---- LSTM: hoist the input projection for ALL timesteps out of the recurrence ----
    xproj = (jnp.dot(feat.astype(jnp.bfloat16), wih_ref[...],
                     preferred_element_type=jnp.float32)
             + bg_ref[...])                                          # (Np, 4*HP)

    whh = whh_ref[...]                                               # (HP, 4*HP) bf16
    h = jnp.zeros((bp, hp), jnp.float32)
    c = jnp.zeros((bp, hp), jnp.float32)

    # T is static & tiny -> fully unrolled recurrence.
    # i/f/o pre-activations were pre-scaled by 0.5, so sigmoid(z) == 0.5*tanh(z/2)+0.5:
    # ONE tanh over the whole 512-lane gate slab per step, cheap VPU fixups after.
    for t in range(t_steps):
        x_t = xproj[t * bp:(t + 1) * bp, :]                          # contiguous rows
        g = x_t + jnp.dot(h.astype(jnp.bfloat16), whh,
                          preferred_element_type=jnp.float32)        # (Bp, 4*HP)
        a = jnp.tanh(g)                                              # single EUP slab op
        i_g = 0.5 * a[:, 0 * hp:1 * hp] + 0.5
        f_g = 0.5 * a[:, 1 * hp:2 * hp] + 0.5
        g_g = a[:, 2 * hp:3 * hp]
        o_g = 0.5 * a[:, 3 * hp:4 * hp] + 0.5
        c = f_g * c + i_g * g_g
        h = o_g * jnp.tanh(c)
        # Padded lanes: pre-act 0 -> g_g=0, i/f/o=0.5 -> c, h stay exactly 0.

    # ---- final Linear on the last hidden state ----
    out_ref[0, :, :] = (jnp.dot(h.astype(jnp.bfloat16), wlin_ref[...],
                                preferred_element_type=jnp.float32)
                        + blin_ref[...]).astype(out_ref.dtype)


# ----------------------------------------------------------------------------
# Parameter generation (PyTorch shapes) and conversion to kernel layouts
# ----------------------------------------------------------------------------
def init_torch_params(key, input_size, seq_len, num_classes):
    f, h = N_FILTER, HIDDEN
    d = f * (seq_len // 2)
    ks = jax.random.split(key, 8)
    return {
        "w_conv": jax.random.normal(ks[0], (f, input_size, 3), jnp.float32) * 0.1,
        "b_conv": jax.random.normal(ks[1], (f,), jnp.float32) * 0.1,
        "w_ih": jax.random.normal(ks[2], (4 * h, d), jnp.float32) * 0.1,
        "w_hh": jax.random.normal(ks[3], (4 * h, h), jnp.float32) * 0.1,
        "b_ih": jax.random.normal(ks[4], (4 * h,), jnp.float32) * 0.1,
        "b_hh": jax.random.normal(ks[5], (4 * h,), jnp.float32) * 0.1,
        "w_lin": jax.random.normal(ks[6], (num_classes, h), jnp.float32) * 0.1,
        "b_lin": jax.random.normal(ks[7], (num_classes,), jnp.float32) * 0.1,
    }


def to_kernel_params(tp, seq_len):
    f, h, hp = N_FILTER, HIDDEN, HIDDEN_PAD
    s = seq_len
    s2 = s // 2
    d = f * s2

    w_conv = np.asarray(tp["w_conv"], np.float32)     # (F, C, 3)
    c_in = w_conv.shape[1]
    b_conv = np.asarray(tp["b_conv"], np.float32)     # (F,)
    w_ih = np.asarray(tp["w_ih"], np.float32)         # (4H, D) torch flatten order
    w_hh = np.asarray(tp["w_hh"], np.float32)         # (4H, H)
    b_g = np.asarray(tp["b_ih"], np.float32) + np.asarray(tp["b_hh"], np.float32)
    w_lin = np.asarray(tp["w_lin"], np.float32)       # (NC, H)
    b_lin = np.asarray(tp["b_lin"], np.float32)       # (NC,)
    nc = w_lin.shape[0]

    # Banded conv+pool matrices, columns in (s2-major, f-minor) layout: col = s2*F + f.
    # conv[s, f] = b[f] + sum_k sum_c x[s+k-1, c] * w_conv[f, c, k]  (zero pad at edges)
    w_even = np.zeros((s, c_in, s2, f), np.float32)
    w_odd = np.zeros((s, c_in, s2, f), np.float32)
    for k in range(3):
        wk = np.transpose(w_conv[:, :, k])            # (C, F)
        for j in range(s2):
            se = 2 * j + k - 1                        # input row feeding even pooled pos
            if 0 <= se < s:
                w_even[se, :, j, :] += wk
            so = 2 * j + k                            # input row feeding odd pooled pos
            if 0 <= so < s:
                w_odd[so, :, j, :] += wk
    w_even = w_even.reshape(s * c_in, d)
    w_odd = w_odd.reshape(s * c_in, d)
    b_conv_tiled = np.tile(b_conv, s2).reshape(1, d)

    # LSTM weights: fold torch Flatten order (f-major) into rows, pad every gate block to
    # a 128-lane boundary, and pre-scale i/f/o blocks by 0.5 (one-tanh gate trick).
    w_ih_perm = np.transpose(w_ih.reshape(4 * h, f, s2), (2, 1, 0)).reshape(d, 4 * h)
    w_hh_t = w_hh.T                                   # (H, 4H)
    w_ih_pad = np.zeros((d, 4 * hp), np.float32)
    w_hh_pad = np.zeros((hp, 4 * hp), np.float32)
    b_g_pad = np.zeros((1, 4 * hp), np.float32)
    for gate in range(4):                             # [i, f, g, o]
        scale = 1.0 if gate == 2 else 0.5
        w_ih_pad[:, gate * hp:gate * hp + h] = scale * w_ih_perm[:, gate * h:(gate + 1) * h]
        w_hh_pad[:h, gate * hp:gate * hp + h] = scale * w_hh_t[:, gate * h:(gate + 1) * h]
        b_g_pad[0, gate * hp:gate * hp + h] = scale * b_g[gate * h:(gate + 1) * h]

    w_lin_pad = np.zeros((hp, nc), np.float32)
    w_lin_pad[:h, :] = w_lin.T

    return {
        "w_even": jnp.asarray(w_even, jnp.bfloat16),
        "w_odd": jnp.asarray(w_odd, jnp.bfloat16),
        "b_conv": jnp.asarray(b_conv_tiled, jnp.float32),
        "w_ih": jnp.asarray(w_ih_pad, jnp.bfloat16),
        "w_hh": jnp.asarray(w_hh_pad, jnp.bfloat16),
        "b_gates": jnp.asarray(b_g_pad, jnp.float32),
        "w_lin": jnp.asarray(w_lin_pad, jnp.bfloat16),
        "b_lin": jnp.asarray(b_lin.reshape(1, nc), jnp.float32),
    }


# ----------------------------------------------------------------------------
# Wrapper: one fused pallas_call (batch-parallel grid axis for v7x's 2 TensorCores)
# ----------------------------------------------------------------------------
@functools.partial(jax.jit, static_argnames=("num_classes",))
def cnnlstm_forward(x, params, *, num_classes):
    b_sz, t_steps, s, c = x.shape
    assert s % 2 == 0, "MaxPool1d(2) path assumes even spatial length S"
    f, hp = N_FILTER, HIDDEN_PAD
    d = f * (s // 2)
    sc = s * c
    g4 = 4 * hp

    grid_b = 2 if (b_sz % 2 == 0 and b_sz >= 2) else 1   # 2 blocks -> 2 TCs on v7x
    bp = b_sz // grid_b
    np_rows = bp * t_steps

    # (B,T,S,C) -> (grid_b, Bp, T, S*C) -> t-major/b-minor rows -> (grid_b, Np, S*C)
    # so each LSTM step reads a contiguous row slice of the hoisted projection.
    x_r = (x.astype(jnp.float32)
           .reshape(grid_b, bp, t_steps, sc)
           .transpose(0, 2, 1, 3)
           .reshape(grid_b, np_rows, sc))

    out = pl.pallas_call(
        cnnlstm_kernel,
        out_shape=jax.ShapeDtypeStruct((grid_b, bp, num_classes), jnp.float32),
        grid=(grid_b,),
        in_specs=[
            pl.BlockSpec((1, np_rows, sc), lambda i: (i, 0, 0)),
            pl.BlockSpec((sc, d), lambda i: (0, 0)),
            pl.BlockSpec((sc, d), lambda i: (0, 0)),
            pl.BlockSpec((1, d), lambda i: (0, 0)),
            pl.BlockSpec((d, g4), lambda i: (0, 0)),
            pl.BlockSpec((hp, g4), lambda i: (0, 0)),
            pl.BlockSpec((1, g4), lambda i: (0, 0)),
            pl.BlockSpec((hp, num_classes), lambda i: (0, 0)),
            pl.BlockSpec((1, num_classes), lambda i: (0, 0)),
        ],
        out_specs=pl.BlockSpec((1, bp, num_classes), lambda i: (i, 0, 0)),
        compiler_params=pltpu.CompilerParams(
            dimension_semantics=("parallel",)),
    )(x_r, params["w_even"], params["w_odd"], params["b_conv"],
      params["w_ih"], params["w_hh"], params["b_gates"],
      params["w_lin"], params["b_lin"])

    return out.reshape(b_sz, num_classes)


# ----------------------------------------------------------------------------
# Pure-JAX reference (exact PyTorch semantics, f32) for a correctness check
# ----------------------------------------------------------------------------
def reference_forward(x, tp):
    b_sz, t_steps, s, c = x.shape
    f = tp["w_conv"].shape[0]
    h = tp["w_hh"].shape[1]
    n = b_sz * t_steps
    xin = jnp.transpose(x.reshape(n, s, c).astype(jnp.float32), (0, 2, 1))   # (N, C, S)
    xpad = jnp.pad(xin, ((0, 0), (0, 0), (1, 1)))
    conv = jnp.zeros((n, f, s), jnp.float32)
    for k in range(3):
        conv = conv + jnp.einsum("ncs,fc->nfs", xpad[:, :, k:k + s], tp["w_conv"][:, :, k])
    conv = conv + tp["b_conv"][None, :, None]
    act = jnp.maximum(conv, 0.0)
    pooled = jnp.max(act.reshape(n, f, s // 2, 2), axis=-1)
    r_in = pooled.reshape(b_sz, t_steps, f * (s // 2))

    bias = tp["b_ih"] + tp["b_hh"]
    hh = jnp.zeros((b_sz, h), jnp.float32)
    cc = jnp.zeros((b_sz, h), jnp.float32)
    for t in range(t_steps):
        gates = r_in[:, t, :] @ tp["w_ih"].T + hh @ tp["w_hh"].T + bias
        i_g = jax.nn.sigmoid(gates[:, 0:h])
        f_g = jax.nn.sigmoid(gates[:, h:2 * h])
        g_g = jnp.tanh(gates[:, 2 * h:3 * h])
        o_g = jax.nn.sigmoid(gates[:, 3 * h:4 * h])
        cc = f_g * cc + i_g * g_g
        hh = o_g * jnp.tanh(cc)
    return hh @ tp["w_lin"].T + tp["b_lin"][None, :]


if __name__ == "__main__":
    # Small shapes consistent with the module's forward:
    # x: (batch=2, timesteps=8, S=16, C=input_size=4); num_classes=3.
    B, T, S, C = 2, 8, 16, 4
    NUM_CLASSES = 3

    key = jax.random.PRNGKey(0)
    kx, kp = jax.random.split(key)
    x = jax.random.normal(kx, (B, T, S, C), jnp.float32)

    torch_params = init_torch_params(kp, input_size=C, seq_len=S, num_classes=NUM_CLASSES)
    params = to_kernel_params(torch_params, seq_len=S)

    out = cnnlstm_forward(x, params, num_classes=NUM_CLASSES)
    out = jax.block_until_ready(out)

    assert out.shape == (B, NUM_CLASSES), out.shape
    assert bool(jnp.all(jnp.isfinite(out)))

    # Correctness check against the f32 reference (loose tol: bf16 MXU operands).
    ref = reference_forward(x, torch_params)
    max_err = float(jnp.max(jnp.abs(out - ref)))
    assert max_err < 5e-2, f"kernel/reference mismatch: max abs err {max_err}"

    print("KERNEL_OK")
</pallas_src>

<mosaic_0001>
module attributes {stable_mosaic.version = 11 : i64} {
  func.func @cnnlstm_kernel(%arg0: i32, %arg1: memref<1x8x64xf32, #tpu.memory_space<vmem>>, %arg2: memref<64x40xbf16, #tpu.memory_space<vmem>>, %arg3: memref<64x40xbf16, #tpu.memory_space<vmem>>, %arg4: memref<1x40xf32, #tpu.memory_space<vmem>>, %arg5: memref<40x512xbf16, #tpu.memory_space<vmem>>, %arg6: memref<128x512xbf16, #tpu.memory_space<vmem>>, %arg7: memref<1x512xf32, #tpu.memory_space<vmem>>, %arg8: memref<128x3xbf16, #tpu.memory_space<vmem>>, %arg9: memref<1x3xf32, #tpu.memory_space<vmem>>, %arg10: memref<1x1x3xf32, #tpu.memory_space<vmem>>) attributes {dimension_semantics = [#tpu.dimension_semantics<parallel>], iteration_bounds = array<i64: 2>, scalar_prefetch = 0 : i64, scratch_operands = 0 : i64, tpu.core_type = #tpu.core_type<tc>, window_params = [{transform_indices = @transform_0, window_bounds = array<i64: 1, 8, 64>}, {pipeline_mode = #tpu.pipeline_mode<synchronous>, transform_indices = @transform_1, window_bounds = array<i64: 64, 40>}, {pipeline_mode = #tpu.pipeline_mode<synchronous>, transform_indices = @transform_2, window_bounds = array<i64: 64, 40>}, {pipeline_mode = #tpu.pipeline_mode<synchronous>, transform_indices = @transform_3, window_bounds = array<i64: 1, 40>}, {pipeline_mode = #tpu.pipeline_mode<synchronous>, transform_indices = @transform_4, window_bounds = array<i64: 40, 512>}, {pipeline_mode = #tpu.pipeline_mode<synchronous>, transform_indices = @transform_5, window_bounds = array<i64: 128, 512>}, {pipeline_mode = #tpu.pipeline_mode<synchronous>, transform_indices = @transform_6, window_bounds = array<i64: 1, 512>}, {pipeline_mode = #tpu.pipeline_mode<synchronous>, transform_indices = @transform_7, window_bounds = array<i64: 128, 3>}, {pipeline_mode = #tpu.pipeline_mode<synchronous>, transform_indices = @transform_8, window_bounds = array<i64: 1, 3>}, {transform_indices = @transform_9, window_bounds = array<i64: 1, 1, 3>}]} {
    %c0 = arith.constant 0 : index
    %c0_0 = arith.constant 0 : index
    %c0_1 = arith.constant 0 : index
    %0 = vector.load %arg1[%c0, %c0_0, %c0_1] : memref<1x8x64xf32, #tpu.memory_space<vmem>>, vector<1x8x64xf32>
    %1 = vector.shape_cast %0 : vector<1x8x64xf32> to vector<8x64xf32>
    %2 = arith.truncf %1 : vector<8x64xf32> to vector<8x64xbf16>
    %c0_2 = arith.constant 0 : index
    %c0_3 = arith.constant 0 : index
    %3 = vector.load %arg2[%c0_2, %c0_3] : memref<64x40xbf16, #tpu.memory_space<vmem>>, vector<64x40xbf16>
    %cst = arith.constant dense<0.000000e+00> : vector<8x40xf32>
    %4 = tpu.matmul %2, %3, %cst {dimension_numbers = #tpu.dot_dimension_numbers<[1], [0], [0], [1], [0, 0, 1, 1], [], []>} : vector<8x64xbf16>, vector<64x40xbf16>, vector<8x40xf32> -> vector<8x40xf32>
    %c0_4 = arith.constant 0 : index
    %c0_5 = arith.constant 0 : index
    %5 = vector.load %arg3[%c0_4, %c0_5] : memref<64x40xbf16, #tpu.memory_space<vmem>>, vector<64x40xbf16>
    %cst_6 = arith.constant dense<0.000000e+00> : vector<8x40xf32>
    %6 = tpu.matmul %2, %5, %cst_6 {dimension_numbers = #tpu.dot_dimension_numbers<[1], [0], [0], [1], [0, 0, 1, 1], [], []>} : vector<8x64xbf16>, vector<64x40xbf16>, vector<8x40xf32> -> vector<8x40xf32>
    %7 = arith.maximumf %4, %6 : vector<8x40xf32>
    %c0_7 = arith.constant 0 : index
    %c0_8 = arith.constant 0 : index
    %8 = vector.load %arg4[%c0_7, %c0_8] : memref<1x40xf32, #tpu.memory_space<vmem>>, vector<1x40xf32>
    %9 = vector.broadcast %8 : vector<1x40xf32> to vector<8x40xf32>
    %10 = arith.addf %7, %9 : vector<8x40xf32>
    %cst_9 = arith.constant 0.000000e+00 : f32
    %11 = vector.broadcast %cst_9 : f32 to vector<8x40xf32>
    %12 = arith.maximumf %10, %11 : vector<8x40xf32>
    %13 = arith.truncf %12 : vector<8x40xf32> to vector<8x40xbf16>
    %c0_10 = arith.constant 0 : index
    %c0_11 = arith.constant 0 : index
    %14 = vector.load %arg5[%c0_10, %c0_11] : memref<40x512xbf16, #tpu.memory_space<vmem>>, vector<40x512xbf16>
    %cst_12 = arith.constant dense<0.000000e+00> : vector<8x512xf32>
    %15 = tpu.matmul %13, %14, %cst_12 {dimension_numbers = #tpu.dot_dimension_numbers<[1], [0], [0], [1], [0, 0, 1, 1], [], []>} : vector<8x40xbf16>, vector<40x512xbf16>, vector<8x512xf32> -> vector<8x512xf32>
    %c0_13 = arith.constant 0 : index
    %c0_14 = arith.constant 0 : index
    %16 = vector.load %arg7[%c0_13, %c0_14] : memref<1x512xf32, #tpu.memory_space<vmem>>, vector<1x512xf32>
    %17 = vector.broadcast %16 : vector<1x512xf32> to vector<8x512xf32>
    %18 = arith.addf %15, %17 : vector<8x512xf32>
    %c0_15 = arith.constant 0 : index
    %c0_16 = arith.constant 0 : index
    %19 = vector.load %arg6[%c0_15, %c0_16] : memref<128x512xbf16, #tpu.memory_space<vmem>>, vector<128x512xbf16>
    %cst_17 = arith.constant 0.000000e+00 : f32
    %20 = vector.broadcast %cst_17 : f32 to vector<1x128xf32>
    %cst_18 = arith.constant 0.000000e+00 : f32
    %21 = vector.broadcast %cst_18 : f32 to vector<1x128xf32>
    %22 = vector.extract_strided_slice %18 {offsets = [0, 0], sizes = [1, 512], strides = [1, 1]} : vector<8x512xf32> to vector<1x512xf32>
    %23 = arith.truncf %20 : vector<1x128xf32> to vector<1x128xbf16>
    %cst_19 = arith.constant dense<0.000000e+00> : vector<1x512xf32>
    %24 = tpu.matmul %23, %19, %cst_19 {dimension_numbers = #tpu.dot_dimension_numbers<[1], [0], [0], [1], [0, 0, 1, 1], [], []>} : vector<1x128xbf16>, vector<128x512xbf16>, vector<1x512xf32> -> vector<1x512xf32>
    %25 = arith.addf %22, %24 : vector<1x512xf32>
    %26 = math.tanh %25 : vector<1x512xf32>
    %27 = vector.extract_strided_slice %26 {offsets = [0, 0], sizes = [1, 128], strides = [1, 1]} : vector<1x512xf32> to vector<1x128xf32>
    %cst_20 = arith.constant 5.000000e-01 : f32
    %28 = vector.broadcast %cst_20 : f32 to vector<1x128xf32>
    %29 = arith.mulf %28, %27 : vector<1x128xf32>
    %cst_21 = arith.constant 5.000000e-01 : f32
    %30 = vector.broadcast %cst_21 : f32 to vector<1x128xf32>
    %31 = arith.addf %29, %30 : vector<1x128xf32>
    %32 = vector.extract_strided_slice %26 {offsets = [0, 128], sizes = [1, 128], strides = [1, 1]} : vector<1x512xf32> to vector<1x128xf32>
    %cst_22 = arith.constant 5.000000e-01 : f32
    %33 = vector.broadcast %cst_22 : f32 to vector<1x128xf32>
    %34 = arith.mulf %33, %32 : vector<1x128xf32>
    %cst_23 = arith.constant 5.000000e-01 : f32
    %35 = vector.broadcast %cst_23 : f32 to vector<1x128xf32>
    %36 = arith.addf %34, %35 : vector<1x128xf32>
    %37 = vector.extract_strided_slice %26 {offsets = [0, 256], sizes = [1, 128], strides = [1, 1]} : vector<1x512xf32> to vector<1x128xf32>
    %38 = vector.extract_strided_slice %26 {offsets = [0, 384], sizes = [1, 128], strides = [1, 1]} : vector<1x512xf32> to vector<1x128xf32>
    %cst_24 = arith.constant 5.000000e-01 : f32
    %39 = vector.broadcast %cst_24 : f32 to vector<1x128xf32>
    %40 = arith.mulf %39, %38 : vector<1x128xf32>
    %cst_25 = arith.constant 5.000000e-01 : f32
    %41 = vector.broadcast %cst_25 : f32 to vector<1x128xf32>
    %42 = arith.addf %40, %41 : vector<1x128xf32>
    %43 = arith.mulf %36, %21 : vector<1x128xf32>
    %44 = arith.mulf %31, %37 : vector<1x128xf32>
    %45 = arith.addf %43, %44 : vector<1x128xf32>
    %46 = math.tanh %45 : vector<1x128xf32>
    %47 = arith.mulf %42, %46 : vector<1x128xf32>
    %48 = vector.extract_strided_slice %18 {offsets = [1, 0], sizes = [1, 512], strides = [1, 1]} : vector<8x512xf32> to vector<1x512xf32>
    %49 = arith.truncf %47 : vector<1x128xf32> to vector<1x128xbf16>
    %cst_26 = arith.constant dense<0.000000e+00> : vector<1x512xf32>
    %50 = tpu.matmul %49, %19, %cst_26 {dimension_numbers = #tpu.dot_dimension_numbers<[1], [0], [0], [1], [0, 0, 1, 1], [], []>} : vector<1x128xbf16>, vector<128x512xbf16>, vector<1x512xf32> -> vector<1x512xf32>
    %51 = arith.addf %48, %50 : vector<1x512xf32>
    %52 = math.tanh %51 : vector<1x512xf32>
    %53 = vector.extract_strided_slice %52 {offsets = [0, 0], sizes = [1, 128], strides = [1, 1]} : vector<1x512xf32> to vector<1x128xf32>
    %cst_27 = arith.constant 5.000000e-01 : f32
    %54 = vector.broadcast %cst_27 : f32 to vector<1x128xf32>
    %55 = arith.mulf %54, %53 : vector<1x128xf32>
    %cst_28 = arith.constant 5.000000e-01 : f32
    %56 = vector.broadcast %cst_28 : f32 to vector<1x128xf32>
    %57 = arith.addf %55, %56 : vector<1x128xf32>
    %58 = vector.extract_strided_slice %52 {offsets = [0, 128], sizes = [1, 128], strides = [1, 1]} : vector<1x512xf32> to vector<1x128xf32>
    %cst_29 = arith.constant 5.000000e-01 : f32
    %59 = vector.broadcast %cst_29 : f32 to vector<1x128xf32>
    %60 = arith.mulf %59, %58 : vector<1x128xf32>
    %cst_30 = arith.constant 5.000000e-01 : f32
    %61 = vector.broadcast %cst_30 : f32 to vector<1x128xf32>
    %62 = arith.addf %60, %61 : vector<1x128xf32>
    %63 = vector.extract_strided_slice %52 {offsets = [0, 256], sizes = [1, 128], strides = [1, 1]} : vector<1x512xf32> to vector<1x128xf32>
    %64 = vector.extract_strided_slice %52 {offsets = [0, 384], sizes = [1, 128], strides = [1, 1]} : vector<1x512xf32> to vector<1x128xf32>
    %cst_31 = arith.constant 5.000000e-01 : f32
    %65 = vector.broadcast %cst_31 : f32 to vector<1x128xf32>
    %66 = arith.mulf %65, %64 : vector<1x128xf32>
    %cst_32 = arith.constant 5.000000e-01 : f32
    %67 = vector.broadcast %cst_32 : f32 to vector<1x128xf32>
    %68 = arith.addf %66, %67 : vector<1x128xf32>
    %69 = arith.mulf %62, %45 : vector<1x128xf32>
    %70 = arith.mulf %57, %63 : vector<1x128xf32>
    %71 = arith.addf %69, %70 : vector<1x128xf32>
    %72 = math.tanh %71 : vector<1x128xf32>
    %73 = arith.mulf %68, %72 : vector<1x128xf32>
    %74 = vector.extract_strided_slice %18 {offsets = [2, 0], sizes = [1, 512], strides = [1, 1]} : vector<8x512xf32> to vector<1x512xf32>
    %75 = arith.truncf %73 : vector<1x128xf32> to vector<1x128xbf16>
    %cst_33 = arith.constant dense<0.000000e+00> : vector<1x512xf32>
    %76 = tpu.matmul %75, %19, %cst_33 {dimension_numbers = #tpu.dot_dimension_numbers<[1], [0], [0], [1], [0, 0, 1, 1], [], []>} : vector<1x128xbf16>, vector<128x512xbf16>, vector<1x512xf32> -> vector<1x512xf32>
    %77 = arith.addf %74, %76 : vector<1x512xf32>
    %78 = math.tanh %77 : vector<1x512xf32>
    %79 = vector.extract_strided_slice %78 {offsets = [0, 0], sizes = [1, 128], strides = [1, 1]} : vector<1x512xf32> to vector<1x128xf32>
    %cst_34 = arith.constant 5.000000e-01 : f32
    %80 = vector.broadcast %cst_34 : f32 to vector<1x128xf32>
    %81 = arith.mulf %80, %79 : vector<1x128xf32>
    %cst_35 = arith.constant 5.000000e-01 : f32
    %82 = vector.broadcast %cst_35 : f32 to vector<1x128xf32>
    %83 = arith.addf %81, %82 : vector<1x128xf32>
    %84 = vector.extract_strided_slice %78 {offsets = [0, 128], sizes = [1, 128], strides = [1, 1]} : vector<1x512xf32> to vector<1x128xf32>
    %cst_36 = arith.constant 5.000000e-01 : f32
    %85 = vector.broadcast %cst_36 : f32 to vector<1x128xf32>
    %86 = arith.mulf %85, %84 : vector<1x128xf32>
    %cst_37 = arith.constant 5.000000e-01 : f32
    %87 = vector.broadcast %cst_37 : f32 to vector<1x128xf32>
    %88 = arith.addf %86, %87 : vector<1x128xf32>
    %89 = vector.extract_strided_slice %78 {offsets = [0, 256], sizes = [1, 128], strides = [1, 1]} : vector<1x512xf32> to vector<1x128xf32>
    %90 = vector.extract_strided_slice %78 {offsets = [0, 384], sizes = [1, 128], strides = [1, 1]} : vector<1x512xf32> to vector<1x128xf32>
    %cst_38 = arith.constant 5.000000e-01 : f32
    %91 = vector.broadcast %cst_38 : f32 to vector<1x128xf32>
    %92 = arith.mulf %91, %90 : vector<1x128xf32>
    %cst_39 = arith.constant 5.000000e-01 : f32
    %93 = vector.broadcast %cst_39 : f32 to vector<1x128xf32>
    %94 = arith.addf %92, %93 : vector<1x128xf32>
    %95 = arith.mulf %88, %71 : vector<1x128xf32>
    %96 = arith.mulf %83, %89 : vector<1x128xf32>
    %97 = arith.addf %95, %96 : vector<1x128xf32>
    %98 = math.tanh %97 : vector<1x128xf32>
    %99 = arith.mulf %94, %98 : vector<1x128xf32>
    %100 = vector.extract_strided_slice %18 {offsets = [3, 0], sizes = [1, 512], strides = [1, 1]} : vector<8x512xf32> to vector<1x512xf32>
    %101 = arith.truncf %99 : vector<1x128xf32> to vector<1x128xbf16>
    %cst_40 = arith.constant dense<0.000000e+00> : vector<1x512xf32>
    %102 = tpu.matmul %101, %19, %cst_40 {dimension_numbers = #tpu.dot_dimension_numbers<[1], [0], [0], [1], [0, 0, 1, 1], [], []>} : vector<1x128xbf16>, vector<128x512xbf16>, vector<1x512xf32> -> vector<1x512xf32>
    %103 = arith.addf %100, %102 : vector<1x512xf32>
    %104 = math.tanh %103 : vector<1x512xf32>
    %105 = vector.extract_strided_slice %104 {offsets = [0, 0], sizes = [1, 128], strides = [1, 1]} : vector<1x512xf32> to vector<1x128xf32>
    %cst_41 = arith.constant 5.000000e-01 : f32
    %106 = vector.broadcast %cst_41 : f32 to vector<1x128xf32>
    %107 = arith.mulf %106, %105 : vector<1x128xf32>
    %cst_42 = arith.constant 5.000000e-01 : f32
    %108 = vector.broadcast %cst_42 : f32 to vector<1x128xf32>
    %109 = arith.addf %107, %108 : vector<1x128xf32>
    %110 = vector.extract_strided_slice %104 {offsets = [0, 128], sizes = [1, 128], strides = [1, 1]} : vector<1x512xf32> to vector<1x128xf32>
    %cst_43 = arith.constant 5.000000e-01 : f32
    %111 = vector.broadcast %cst_43 : f32 to vector<1x128xf32>
    %112 = arith.mulf %111, %110 : vector<1x128xf32>
    %cst_44 = arith.constant 5.000000e-01 : f32
    %113 = vector.broadcast %cst_44 : f32 to vector<1x128xf32>
    %114 = arith.addf %112, %113 : vector<1x128xf32>
    %115 = vector.extract_strided_slice %104 {offsets = [0, 256], sizes = [1, 128], strides = [1, 1]} : vector<1x512xf32> to vector<1x128xf32>
    %116 = vector.extract_strided_slice %104 {offsets = [0, 384], sizes = [1, 128], strides = [1, 1]} : vector<1x512xf32> to vector<1x128xf32>
    %cst_45 = arith.constant 5.000000e-01 : f32
    %117 = vector.broadcast %cst_45 : f32 to vector<1x128xf32>
    %118 = arith.mulf %117, %116 : vector<1x128xf32>
    %cst_46 = arith.constant 5.000000e-01 : f32
    %119 = vector.broadcast %cst_46 : f32 to vector<1x128xf32>
    %120 = arith.addf %118, %119 : vector<1x128xf32>
    %121 = arith.mulf %114, %97 : vector<1x128xf32>
    %122 = arith.mulf %109, %115 : vector<1x128xf32>
    %123 = arith.addf %121, %122 : vector<1x128xf32>
    %124 = math.tanh %123 : vector<1x128xf32>
    %125 = arith.mulf %120, %124 : vector<1x128xf32>
    %126 = vector.extract_strided_slice %18 {offsets = [4, 0], sizes = [1, 512], strides = [1, 1]} : vector<8x512xf32> to vector<1x512xf32>
    %127 = arith.truncf %125 : vector<1x128xf32> to vector<1x128xbf16>
    %cst_47 = arith.constant dense<0.000000e+00> : vector<1x512xf32>
    %128 = tpu.matmul %127, %19, %cst_47 {dimension_numbers = #tpu.dot_dimension_numbers<[1], [0], [0], [1], [0, 0, 1, 1], [], []>} : vector<1x128xbf16>, vector<128x512xbf16>, vector<1x512xf32> -> vector<1x512xf32>
    %129 = arith.addf %126, %128 : vector<1x512xf32>
    %130 = math.tanh %129 : vector<1x512xf32>
    %131 = vector.extract_strided_slice %130 {offsets = [0, 0], sizes = [1, 128], strides = [1, 1]} : vector<1x512xf32> to vector<1x128xf32>
    %cst_48 = arith.constant 5.000000e-01 : f32
    %132 = vector.broadcast %cst_48 : f32 to vector<1x128xf32>
    %133 = arith.mulf %132, %131 : vector<1x128xf32>
    %cst_49 = arith.constant 5.000000e-01 : f32
    %134 = vector.broadcast %cst_49 : f32 to vector<1x128xf32>
    %135 = arith.addf %133, %134 : vector<1x128xf32>
    %136 = vector.extract_strided_slice %130 {offsets = [0, 128], sizes = [1, 128], strides = [1, 1]} : vector<1x512xf32> to vector<1x128xf32>
    %cst_50 = arith.constant 5.000000e-01 : f32
    %137 = vector.broadcast %cst_50 : f32 to vector<1x128xf32>
    %138 = arith.mulf %137, %136 : vector<1x128xf32>
    %cst_51 = arith.constant 5.000000e-01 : f32
    %139 = vector.broadcast %cst_51 : f32 to vector<1x128xf32>
    %140 = arith.addf %138, %139 : vector<1x128xf32>
    %141 = vector.extract_strided_slice %130 {offsets = [0, 256], sizes = [1, 128], strides = [1, 1]} : vector<1x512xf32> to vector<1x128xf32>
    %142 = vector.extract_strided_slice %130 {offsets = [0, 384], sizes = [1, 128], strides = [1, 1]} : vector<1x512xf32> to vector<1x128xf32>
    %cst_52 = arith.constant 5.000000e-01 : f32
    %143 = vector.broadcast %cst_52 : f32 to vector<1x128xf32>
    %144 = arith.mulf %143, %142 : vector<1x128xf32>
    %cst_53 = arith.constant 5.000000e-01 : f32
    %145 = vector.broadcast %cst_53 : f32 to vector<1x128xf32>
    %146 = arith.addf %144, %145 : vector<1x128xf32>
    %147 = arith.mulf %140, %123 : vector<1x128xf32>
    %148 = arith.mulf %135, %141 : vector<1x128xf32>
    %149 = arith.addf %147, %148 : vector<1x128xf32>
    %150 = math.tanh %149 : vector<1x128xf32>
    %151 = arith.mulf %146, %150 : vector<1x128xf32>
    %152 = vector.extract_strided_slice %18 {offsets = [5, 0], sizes = [1, 512], strides = [1, 1]} : vector<8x512xf32> to vector<1x512xf32>
    %153 = arith.truncf %151 : vector<1x128xf32> to vector<1x128xbf16>
    %cst_54 = arith.constant dense<0.000000e+00> : vector<1x512xf32>
    %154 = tpu.matmul %153, %19, %cst_54 {dimension_numbers = #tpu.dot_dimension_numbers<[1], [0], [0], [1], [0, 0, 1, 1], [], []>} : vector<1x128xbf16>, vector<128x512xbf16>, vector<1x512xf32> -> vector<1x512xf32>
    %155 = arith.addf %152, %154 : vector<1x512xf32>
    %156 = math.tanh %155 : vector<1x512xf32>
    %157 = vector.extract_strided_slice %156 {offsets = [0, 0], sizes = [1, 128], strides = [1, 1]} : vector<1x512xf32> to vector<1x128xf32>
    %cst_55 = arith.constant 5.000000e-01 : f32
    %158 = vector.broadcast %cst_55 : f32 to vector<1x128xf32>
    %159 = arith.mulf %158, %157 : vector<1x128xf32>
    %cst_56 = arith.constant 5.000000e-01 : f32
    %160 = vector.broadcast %cst_56 : f32 to vector<1x128xf32>
    %161 = arith.addf %159, %160 : vector<1x128xf32>
    %162 = vector.extract_strided_slice %156 {offsets = [0, 128], sizes = [1, 128], strides = [1, 1]} : vector<1x512xf32> to vector<1x128xf32>
    %cst_57 = arith.constant 5.000000e-01 : f32
    %163 = vector.broadcast %cst_57 : f32 to vector<1x128xf32>
    %164 = arith.mulf %163, %162 : vector<1x128xf32>
    %cst_58 = arith.constant 5.000000e-01 : f32
    %165 = vector.broadcast %cst_58 : f32 to vector<1x128xf32>
    %166 = arith.addf %164, %165 : vector<1x128xf32>
    %167 = vector.extract_strided_slice %156 {offsets = [0, 256], sizes = [1, 128], strides = [1, 1]} : vector<1x512xf32> to vector<1x128xf32>
    %168 = vector.extract_strided_slice %156 {offsets = [0, 384], sizes = [1, 128], strides = [1, 1]} : vector<1x512xf32> to vector<1x128xf32>
    %cst_59 = arith.constant 5.000000e-01 : f32
    %169 = vector.broadcast %cst_59 : f32 to vector<1x128xf32>
    %170 = arith.mulf %169, %168 : vector<1x128xf32>
    %cst_60 = arith.constant 5.000000e-01 : f32
    %171 = vector.broadcast %cst_60 : f32 to vector<1x128xf32>
    %172 = arith.addf %170, %171 : vector<1x128xf32>
    %173 = arith.mulf %166, %149 : vector<1x128xf32>
    %174 = arith.mulf %161, %167 : vector<1x128xf32>
    %175 = arith.addf %173, %174 : vector<1x128xf32>
    %176 = math.tanh %175 : vector<1x128xf32>
    %177 = arith.mulf %172, %176 : vector<1x128xf32>
    %178 = vector.extract_strided_slice %18 {offsets = [6, 0], sizes = [1, 512], strides = [1, 1]} : vector<8x512xf32> to vector<1x512xf32>
    %179 = arith.truncf %177 : vector<1x128xf32> to vector<1x128xbf16>
    %cst_61 = arith.constant dense<0.000000e+00> : vector<1x512xf32>
    %180 = tpu.matmul %179, %19, %cst_61 {dimension_numbers = #tpu.dot_dimension_numbers<[1], [0], [0], [1], [0, 0, 1, 1], [], []>} : vector<1x128xbf16>, vector<128x512xbf16>, vector<1x512xf32> -> vector<1x512xf32>
    %181 = arith.addf %178, %180 : vector<1x512xf32>
    %182 = math.tanh %181 : vector<1x512xf32>
    %183 = vector.extract_strided_slice %182 {offsets = [0, 0], sizes = [1, 128], strides = [1, 1]} : vector<1x512xf32> to vector<1x128xf32>
    %cst_62 = arith.constant 5.000000e-01 : f32
    %184 = vector.broadcast %cst_62 : f32 to vector<1x128xf32>
    %185 = arith.mulf %184, %183 : vector<1x128xf32>
    %cst_63 = arith.constant 5.000000e-01 : f32
    %186 = vector.broadcast %cst_63 : f32 to vector<1x128xf32>
    %187 = arith.addf %185, %186 : vector<1x128xf32>
    %188 = vector.extract_strided_slice %182 {offsets = [0, 128], sizes = [1, 128], strides = [1, 1]} : vector<1x512xf32> to vector<1x128xf32>
    %cst_64 = arith.constant 5.000000e-01 : f32
    %189 = vector.broadcast %cst_64 : f32 to vector<1x128xf32>
    %190 = arith.mulf %189, %188 : vector<1x128xf32>
    %cst_65 = arith.constant 5.000000e-01 : f32
    %191 = vector.broadcast %cst_65 : f32 to vector<1x128xf32>
    %192 = arith.addf %190, %191 : vector<1x128xf32>
    %193 = vector.extract_strided_slice %182 {offsets = [0, 256], sizes = [1, 128], strides = [1, 1]} : vector<1x512xf32> to vector<1x128xf32>
    %194 = vector.extract_strided_slice %182 {offsets = [0, 384], sizes = [1, 128], strides = [1, 1]} : vector<1x512xf32> to vector<1x128xf32>
    %cst_66 = arith.constant 5.000000e-01 : f32
    %195 = vector.broadcast %cst_66 : f32 to vector<1x128xf32>
    %196 = arith.mulf %195, %194 : vector<1x128xf32>
    %cst_67 = arith.constant 5.000000e-01 : f32
    %197 = vector.broadcast %cst_67 : f32 to vector<1x128xf32>
    %198 = arith.addf %196, %197 : vector<1x128xf32>
    %199 = arith.mulf %192, %175 : vector<1x128xf32>
    %200 = arith.mulf %187, %193 : vector<1x128xf32>
    %201 = arith.addf %199, %200 : vector<1x128xf32>
    %202 = math.tanh %201 : vector<1x128xf32>
    %203 = arith.mulf %198, %202 : vector<1x128xf32>
    %204 = vector.extract_strided_slice %18 {offsets = [7, 0], sizes = [1, 512], strides = [1, 1]} : vector<8x512xf32> to vector<1x512xf32>
    %205 = arith.truncf %203 : vector<1x128xf32> to vector<1x128xbf16>
    %cst_68 = arith.constant dense<0.000000e+00> : vector<1x512xf32>
    %206 = tpu.matmul %205, %19, %cst_68 {dimension_numbers = #tpu.dot_dimension_numbers<[1], [0], [0], [1], [0, 0, 1, 1], [], []>} : vector<1x128xbf16>, vector<128x512xbf16>, vector<1x512xf32> -> vector<1x512xf32>
    %207 = arith.addf %204, %206 : vector<1x512xf32>
    %208 = math.tanh %207 : vector<1x512xf32>
    %209 = vector.extract_strided_slice %208 {offsets = [0, 0], sizes = [1, 128], strides = [1, 1]} : vector<1x512xf32> to vector<1x128xf32>
    %cst_69 = arith.constant 5.000000e-01 : f32
    %210 = vector.broadcast %cst_69 : f32 to vector<1x128xf32>
    %211 = arith.mulf %210, %209 : vector<1x128xf32>
    %cst_70 = arith.constant 5.000000e-01 : f32
    %212 = vector.broadcast %cst_70 : f32 to vector<1x128xf32>
    %213 = arith.addf %211, %212 : vector<1x128xf32>
    %214 = vector.extract_strided_slice %208 {offsets = [0, 128], sizes = [1, 128], strides = [1, 1]} : vector<1x512xf32> to vector<1x128xf32>
    %cst_71 = arith.constant 5.000000e-01 : f32
    %215 = vector.broadcast %cst_71 : f32 to vector<1x128xf32>
    %216 = arith.mulf %215, %214 : vector<1x128xf32>
    %cst_72 = arith.constant 5.000000e-01 : f32
    %217 = vector.broadcast %cst_72 : f32 to vector<1x128xf32>
    %218 = arith.addf %216, %217 : vector<1x128xf32>
    %219 = vector.extract_strided_slice %208 {offsets = [0, 256], sizes = [1, 128], strides = [1, 1]} : vector<1x512xf32> to vector<1x128xf32>
    %220 = vector.extract_strided_slice %208 {offsets = [0, 384], sizes = [1, 128], strides = [1, 1]} : vector<1x512xf32> to vector<1x128xf32>
    %cst_73 = arith.constant 5.000000e-01 : f32
    %221 = vector.broadcast %cst_73 : f32 to vector<1x128xf32>
    %222 = arith.mulf %221, %220 : vector<1x128xf32>
    %cst_74 = arith.constant 5.000000e-01 : f32
    %223 = vector.broadcast %cst_74 : f32 to vector<1x128xf32>
    %224 = arith.addf %222, %223 : vector<1x128xf32>
    %225 = arith.mulf %218, %201 : vector<1x128xf32>
    %226 = arith.mulf %213, %219 : vector<1x128xf32>
    %227 = arith.addf %225, %226 : vector<1x128xf32>
    %228 = math.tanh %227 : vector<1x128xf32>
    %229 = arith.mulf %224, %228 : vector<1x128xf32>
    %230 = arith.truncf %229 : vector<1x128xf32> to vector<1x128xbf16>
    %c0_75 = arith.constant 0 : index
    %c0_76 = arith.constant 0 : index
    %231 = vector.load %arg8[%c0_75, %c0_76] : memref<128x3xbf16, #tpu.memory_space<vmem>>, vector<128x3xbf16>
    %cst_77 = arith.constant dense<0.000000e+00> : vector<1x3xf32>
    %232 = tpu.matmul %230, %231, %cst_77 {dimension_numbers = #tpu.dot_dimension_numbers<[1], [0], [0], [1], [0, 0, 1, 1], [], []>} : vector<1x128xbf16>, vector<128x3xbf16>, vector<1x3xf32> -> vector<1x3xf32>
    %c0_78 = arith.constant 0 : index
    %c0_79 = arith.constant 0 : index
    %233 = vector.load %arg9[%c0_78, %c0_79] : memref<1x3xf32, #tpu.memory_space<vmem>>, vector<1x3xf32>
    %234 = arith.addf %232, %233 : vector<1x3xf32>
    %c0_80 = arith.constant 0 : index
    %c0_81 = arith.constant 0 : index
    %c0_82 = arith.constant 0 : index
    %235 = vector.load %arg10[%c0_80, %c0_81, %c0_82] : memref<1x1x3xf32, #tpu.memory_space<vmem>>, vector<1x1x3xf32>
    %236 = vector.shape_cast %235 : vector<1x1x3xf32> to vector<1x3xf32>
    %237 = vector.shape_cast %234 : vector<1x3xf32> to vector<1x1x3xf32>
    tpu.vector_store %arg10[%c0_80, %c0_81, %c0_82], %237 {strides = array<i32>} : memref<1x1x3xf32, #tpu.memory_space<vmem>>, vector<1x1x3xf32>,
    return
  }
  func.func @transform_0(%arg0: i32) -> (i32, i32, i32) {
    %c0_i32 = arith.constant 0 : i32
    %c0_i32_0 = arith.constant 0 : i32
    %c0_i32_1 = arith.constant 0 : i32
    return %arg0, %c0_i32, %c0_i32_0 : i32, i32, i32
  }
  func.func @transform_1(%arg0: i32) -> (i32, i32) {
    %c0_i32 = arith.constant 0 : i32
    %c0_i32_0 = arith.constant 0 : i32
    %c0_i32_1 = arith.constant 0 : i32
    return %c0_i32, %c0_i32_0 : i32, i32
  }
  func.func @transform_2(%arg0: i32) -> (i32, i32) {
    %c0_i32 = arith.constant 0 : i32
    %c0_i32_0 = arith.constant 0 : i32
    %c0_i32_1 = arith.constant 0 : i32
    return %c0_i32, %c0_i32_0 : i32, i32
  }
  func.func @transform_3(%arg0: i32) -> (i32, i32) {
    %c0_i32 = arith.constant 0 : i32
    %c0_i32_0 = arith.constant 0 : i32
    %c0_i32_1 = arith.constant 0 : i32
    return %c0_i32, %c0_i32_0 : i32, i32
  }
  func.func @transform_4(%arg0: i32) -> (i32, i32) {
    %c0_i32 = arith.constant 0 : i32
    %c0_i32_0 = arith.constant 0 : i32
    %c0_i32_1 = arith.constant 0 : i32
    return %c0_i32, %c0_i32_0 : i32, i32
  }
  func.func @transform_5(%arg0: i32) -> (i32, i32) {
    %c0_i32 = arith.constant 0 : i32
    %c0_i32_0 = arith.constant 0 : i32
    %c0_i32_1 = arith.constant 0 : i32
    return %c0_i32, %c0_i32_0 : i32, i32
  }
  func.func @transform_6(%arg0: i32) -> (i32, i32) {
    %c0_i32 = arith.constant 0 : i32
    %c0_i32_0 = arith.constant 0 : i32
    %c0_i32_1 = arith.constant 0 : i32
    return %c0_i32, %c0_i32_0 : i32, i32
  }
  func.func @transform_7(%arg0: i32) -> (i32, i32) {
    %c0_i32 = arith.constant 0 : i32
    %c0_i32_0 = arith.constant 0 : i32
    %c0_i32_1 = arith.constant 0 : i32
    return %c0_i32, %c0_i32_0 : i32, i32
  }
  func.func @transform_8(%arg0: i32) -> (i32, i32) {
    %c0_i32 = arith.constant 0 : i32
    %c0_i32_0 = arith.constant 0 : i32
    %c0_i32_1 = arith.constant 0 : i32
    return %c0_i32, %c0_i32_0 : i32, i32
  }
  func.func @transform_9(%arg0: i32) -> (i32, i32, i32) {
    %c0_i32 = arith.constant 0 : i32
    %c0_i32_0 = arith.constant 0 : i32
    %c0_i32_1 = arith.constant 0 : i32
    return %arg0, %c0_i32, %c0_i32_0 : i32, i32, i32
  }
}

</mosaic_0001>

<bundles_post_ra>
// kernel: cnnlstm_forward.1
= control target key start
LH: loop header
LB: loop body
LE: loop exit
PB: predicated region body
PF: predicated region fallthrough
CT: control target
= control target key end

     0   :  { %14 = vsyncpa [#allocation3], 0  ;;  %s3241_s0 = inlined_call_operand.vmem [shape: f32[2,8,64], index: 0, kind: input, shape index: {}]   ;;  %s3242_s1 = inlined_call_operand.vmem [shape: bf16[64,40], index: 1, kind: input, shape index: {}]   ;;  %s3243_s2 = inlined_call_operand.vmem [shape: bf16[64,40], index: 2, kind: input, shape index: {}]   ;;  %s3244_s3 = inlined_call_operand.vmem [shape: f32[1,40], index: 3, kind: input, shape index: {}]   ;;  %s3245_s4 = inlined_call_operand.vmem [shape: bf16[40,512], index: 4, kind: input, shape index: {}]   ;;  %s3246_s5 = inlined_call_operand.vmem [shape: bf16[128,512], index: 5, kind: input, shape index: {}]   ;;  %s3247_s6 = inlined_call_operand.vmem [shape: f32[1,512], index: 6, kind: input, shape index: {}]   ;;  %s3248_s7 = inlined_call_operand.vmem [shape: bf16[128,3], index: 7, kind: input, shape index: {}]   ;;  %s3249_s8 = inlined_call_operand.vmem [shape: f32[1,3], index: 8, kind: input, shape index: {}]   ;;  %s3250_s9 = inlined_call_operand.hbm [shape: f32[2,1,3], index: 9, kind: output, shape index: {}]  }
   0x1   :  { %16 = vsyncpa [#allocation3 + $0x1], 0  ;;  %s2472_s30 = smov 0   ;;  %s2474_s10 = smov 0  }
   0x2   :  { %s2476_s11 = smov 0   ;;  %s2478_s12 = smov 0  }
   0x3 LB: > { %s2493_s13 = sadd.s32 4294967295, %s2416_s12   ;;  %s1986_s14 = sadd.s32 4294967294, %s2416_s12   ;;  %s2416_s12 = sphi %s2478_s12, %s3256_s12   ;;  %s2412_s11 = sphi %s2476_s11, %s3255_s11   ;;  %s2408_s10 = sphi %s2474_s10, %s3254_s10   ;;  %s2404_s30 = sphi %s2472_s30, %s3253_s30  }
   0x4   : > { %s2497_s15 = sadd.s32 1, %s2416_s12   ;;  %s223_s16 = sadd.s32 1, %s2412_s11 }
   0x5   : > { %s220_s17 = ssub.s32 %s2416_s12, %s2497_s15  ;;  %p233_p0 = scmp.ne.s32.totalorder %s2412_s11, %s2408_s10 }
   0x6   : > { %p221_p1 = scmp.eq.s32.totalorder %s220_s17, 0  ;;  %p234_p2 = scmp.eq.s32.totalorder %s2493_s13, 1 }
   0x7   : > { %p239_p3 = scmp.ne.s32.totalorder %s2408_s10, %s2404_s30  ;;  %p240_p4 = scmp.eq.s32.totalorder %s1986_s14, 1 }
   0x8   : > { %s2508_s18 = scalar_select %p221_p1, %s2412_s11, %s223_s16  }
   0x9   : > { %p2510_p5 = por %p234_p2, %p233_p0  ;;  %p2514_p6 = por %p240_p4, %p239_p3 }
   0xa   : > { %p1989_p7 = scmp.ge.s32.totalorder %s2416_s12, 1  ;;  %p289_p8 = scmp.lt.s32.totalorder %s2416_s12, 3 }
   0xc   : > { %p290_p9 = pnand %p1989_p7, %p289_p8 }
   0xd   : > { %v2166_v0 = vld [vmem:[%s3242_s1] sm:$0xff] (!%p290_p9)   ;;  %v2418_v1 = vmov (!%p290_p9), 0.0   ;;  %v2167_v2 = vld [vmem:[%s3242_s1 + $0x8] sm:$0xff] (!%p290_p9)   ;;  %vm2419_vm0 = vmmov (!%p290_p9), 0   ;;  %p323_p10 = scmp.lt.s32.totalorder (!%p290_p9), %s2493_s13, 1  ;;  %v2168_v3 = vld [vmem:[%s3242_s1 + $0x10] sm:$0xff] (!%p290_p9)  }
   0xe   : > { %293 = sbr.rel (%p290_p9) target bundleno = 2552 (0x9f8), region = 56  ;;  %2080 = vmatprep.subr.bf16.mxu1 (!%p290_p9), %v2418_v1  ;;  %2088 = vmatprep.mubr.msk.bf16.mxu1 (!%p290_p9), %vm2419_vm0, %v2418_v1  ;;  %v2169_v4 = vld [vmem:[%s3242_s1 + $0x18] sm:$0xff] (!%p290_p9)   ;;  %v2170_v6 = vld [vmem:[%s3243_s2] sm:$0xff] (!%p290_p9)   ;;  %vm362_vm1 = vcmask (!%p290_p9), 523264   ;;  %v2171_v8 = vld [vmem:[%s3243_s2 + $0x8] sm:$0xff] (!%p290_p9)   ;;  %vm575_vm2 = vcmask (!%p290_p9), 1043456  }
   0xf   : > { %2081 = vmatpush3.bf16.msra.mxu1 (!%p290_p9), %v2166_v0  ;;  %v2172_v9 = vld [vmem:[%s3243_s2 + $0x10] sm:$0xff] (!%p290_p9)   ;;  %v2173_v10 = vld [vmem:[%s3243_s2 + $0x18] sm:$0xff] (!%p290_p9)   ;;  %v497_v19 = vld [vmem:[%s3245_s4 + $0x40] sm:$0xff] (!%p290_p9)  ;;  %v2420_v29 = vmov (!%p290_p9), 0   ;;  %vm571_vm3 = vcmask (!%p290_p9), 326656   ;;  %s321_s22 = sand.u32 (!%p290_p9), 1, %s2408_s10  }
  0x10   : > { %2082 = vmatprep.subr.bf16.mxu1 (!%p290_p9), %v2418_v1  ;;  %v2174_v11 = vld [vmem:[%s3245_s4 + $0x4] ss:$16 sps:$4 sm:$0xff] (!%p290_p9)   ;;  %v2176_v12 = vld [vmem:[%s3245_s4 + $0x8] ss:$16 sps:$4 sm:$0xff] (!%p290_p9)   ;;  %v2178_v13 = vld [vmem:[%s3245_s4 + $0xc] ss:$16 sps:$4 sm:$0xff] (!%p290_p9)   ;;  %v2011_v21 = vcombine.high (!%p290_p9), %v497_v19, %v497_v19  ;;  %v2010_v23 = vcombine.low (!%p290_p9), %v497_v19, %v497_v19  ;;  %620 = vmatprep.mubr.bf16.mxu0 (!%p290_p9), %v2420_v29 }
  0x11   : > { %v2179_v14 = vld [vmem:[%s3245_s4] ss:$16 sps:$4 sm:$0xff] (!%p290_p9)   ;;  %588 = vmatprep.subr.bf16.mxu0 (!%p290_p9), %v2174_v11  ;;  %v2180_v15 = vld [vmem:[%s3245_s4 + $0x24] ss:$16 sps:$4 sm:$0xff] (!%p290_p9)   ;;  %v2184_v16 = vld [vmem:[%s3245_s4 + $0x2c] ss:$16 sps:$4 sm:$0xff] (!%p290_p9)  }
  0x12   : > { %589 = vmatpush1.bf16.msra.mxu0 (!%p290_p9), %v2179_v14  ;;  %v2182_v17 = vld [vmem:[%s3245_s4 + $0x28] ss:$16 sps:$4 sm:$0xff] (!%p290_p9)   ;;  %v2185_v18 = vld [vmem:[%s3245_s4 + $0x20] ss:$16 sps:$4 sm:$0xff] (!%p290_p9)   ;;  %v577_v25 = vsel (!%p290_p9), %vm575_vm2, %v2010_v23, 0  ;;  %s322_s26 = scalar_lea.vmem (!%p290_p9), [#allocation2], %s321_s22 }
  0x13   : > { %2083 = vmatpush3.bf16.msra.mxu1 (!%p290_p9), %v2167_v2  ;;  %590 = vmatprep.subr.bf16.mxu0 (!%p290_p9), %v2180_v15  ;;  %v498_v20 = vld [vmem:[%s3245_s4 + $0x48] sm:$0xff] (!%p290_p9)  ;;  %v2594_v27 = vld [vmem:[%s3246_s5 + $0x4] ss:$16 sps:$4 sm:$0xff] (!%p290_p9)   ;;  %v2001_v35 = vld [vmem:[%s3244_s3] ss:$0 sm:$0xff] (!%p290_p9)  ;;  %s1931_s27 = sshll.u32 (!%p290_p9), %s322_s26, 4  ;;  %s3201_s27 = int_to_ptr.vmem [resolvable:$true] %s1931_s27 }
  0x14   : > { %2084 = vmatprep.subr.bf16.mxu1 (!%p290_p9), %v2418_v1  ;;  %v2013_v22 = vcombine.high (!%p290_p9), %v498_v20, %v498_v20  ;;  %v2012_v24 = vcombine.low (!%p290_p9), %v498_v20, %v498_v20  ;;  %v2599_v28 = vld [vmem:[%s3246_s5 + $0xc] ss:$16 sps:$4 sm:$0xff] (!%p290_p9)   ;;  %v2611_v42 = vld [vmem:[%s3246_s5] ss:$16 sps:$4 sm:$0xff] (!%p290_p9)   ;;  %v2616_v43 = vld [vmem:[%s3246_s5 + $0x8] ss:$16 sps:$4 sm:$0xff] (!%p290_p9)  }
  0x15   : > { %s324_s25 = scalar_select %p323_p10, %s2493_s13, 1  ;;  %v2621_v45 = vld [vmem:[%s3246_s5 + $0x24] ss:$16 sps:$4 sm:$0xff]   ;;  %v2626_v46 = vld [vmem:[%s3246_s5 + $0x2c] ss:$16 sps:$4 sm:$0xff]   ;;  %vm1916_vm4 = vcmask 16384  }
  0x16   : > { %591 = vmatpush1.bf16.msra.mxu0 %v2185_v18  ;;  %v583_v26 = vsel %vm575_vm2, %v2012_v24, 0  ;;  %v2633_v47 = vld [vmem:[%s3246_s5 + $0x20] ss:$16 sps:$4 sm:$0xff]   ;;  %v2638_v48 = vld [vmem:[%s3246_s5 + $0x28] ss:$16 sps:$4 sm:$0xff]   ;;  %v501_v18 = vlaneseq  ;;  %s2421_s17 = smov [#allocation2]  }
  0x17   : > { %s1990_s28 = sshll.u32 %s324_s25, 3  ;;  %2085 = vmatpush3.bf16.msra.mxu1 %v2168_v3  ;;  %2014 = vmatprep.subr.msk.bf16.mxu0 %vm575_vm2, %v2011_v21  ;;  %v2645_v49 = vld [vmem:[%s3246_s5 + $0x44] ss:$16 sps:$4 sm:$0xff]   ;;  %v2650_v50 = vld [vmem:[%s3246_s5 + $0x4c] ss:$16 sps:$4 sm:$0xff]   ;;  %s2058_s25 = sshll.u32 %s2493_s13, 4 }
  0x18   : > { %s326_s16 = scalar_lea.vmem %s3241_s0, %s1990_s28  ;;  %2086 = vmatprep.subr.bf16.mxu1 %v2418_v1  ;;  %v2659_v51 = vld [vmem:[%s3246_s5 + $0x40] ss:$16 sps:$4 sm:$0xff]   ;;  %v2664_v52 = vld [vmem:[%s3246_s5 + $0x48] ss:$16 sps:$4 sm:$0xff]   ;;  %v2671_v53 = vld [vmem:[%s3246_s5 + $0x64] ss:$16 sps:$4 sm:$0xff]   ;;  %s3199_s14 = scalar_lea.hbm %s3250_s9, %s2058_s25 }
  0x19   : > { %v328_v5 = vld [vmem:[%s326_s16] sm:$0xff]  ;;  %v2676_v54 = vld [vmem:[%s3246_s5 + $0x6c] ss:$16 sps:$4 sm:$0xff]   ;;  %v2688_v56 = vld [vmem:[%s3246_s5 + $0x68] ss:$16 sps:$4 sm:$0xff]   ;;  %v502_v19 = vshrl.u32 %v501_v18, 7 }
  0x1a   : > { %v329_v7 = vpack.c.bf16 %v328_v5, %v328_v5  ;;  %593 = vmatpush1.bf16.msra.mxu0 %v577_v25  ;;  %v2683_v55 = vld [vmem:[%s3246_s5 + $0x60] ss:$16 sps:$4 sm:$0xff]   ;;  %v2695_v57 = vld [vmem:[%s3246_s5 + $0x84] ss:$16 sps:$4 sm:$0xff]   ;;  %v2700_v58 = vld [vmem:[%s3246_s5 + $0x8c] ss:$16 sps:$4 sm:$0xff]  }
  0x1b   : > { %2087 = vmatpush3.bf16.msra.mxu1 %v2169_v4  ;;  %862 = vmatprep.subr.bf16.mxu0 %v2594_v27  ;;  %v2707_v59 = vld [vmem:[%s3246_s5 + $0x80] ss:$16 sps:$4 sm:$0xff]   ;;  %v2712_v60 = vld [vmem:[%s3246_s5 + $0x88] ss:$16 sps:$4 sm:$0xff]   ;;  %v2719_v61 = vld [vmem:[%s3246_s5 + $0xa4] ss:$16 sps:$4 sm:$0xff]  }
  0x1c   : > { %2092 = vmatprep.subr.bf16.mxu1 %v2418_v1  ;;  %v2724_v62 = vld [vmem:[%s3246_s5 + $0xac] ss:$16 sps:$4 sm:$0xff]   ;;  %v2731_v63 = vld [vmem:[%s3246_s5 + $0xa0] ss:$16 sps:$4 sm:$0xff]   ;;  %v2736_v0 = vld [vmem:[%s3246_s5 + $0xa8] ss:$16 sps:$4 sm:$0xff]  }
  0x1d   : > { %v2743_v2 = vld [vmem:[%s3246_s5 + $0xc4] ss:$16 sps:$4 sm:$0xff]   ;;  %v2748_v3 = vld [vmem:[%s3246_s5 + $0xcc] ss:$16 sps:$4 sm:$0xff]   ;;  %v2755_v4 = vld [vmem:[%s3246_s5 + $0xc0] ss:$16 sps:$4 sm:$0xff]  }
  0x1e   : > { %2089 = vmatmul.mubr.msk.bf16.vlgmr.msra.gmra.mrb[0].mxu1 %vm362_vm1, %v329_v7  ;;  %v2760_v5 = vld [vmem:[%s3246_s5 + $0xc8] ss:$16 sps:$4 sm:$0xff]   ;;  %v503_v20 = vsub.s32 0, %v502_v19  ;;  %v499_v21 = vld [vmem:[%s3247_s6] sm:$0xf]  ;;  %v511_v23 = vsub.s32 2, %v502_v19 }
  0x1f   : > { %2093 = vmatpush3.bf16.msra.mxu1 %v2170_v6  ;;  %2100 = vmatprep.mubr.msk.bf16.mxu1 %vm2419_vm0, %v2418_v1  ;;  %v2767_v6 = vld [vmem:[%s3246_s5 + $0xe4] ss:$16 sps:$4 sm:$0xff]   ;;  %s1919_s13 = scalar_lea.sflag [#allocation3], %s321_s22  ;;  %s2354_s16 = scalar_lea.vmem %s3201_s27, 16 }
  0x20   : > { %2094 = vmatprep.subr.bf16.mxu1 %v2418_v1  ;;  %v504_v24 = vrot.slane %v499_v21, %v503_v20  ;;  %p2355_p11 = scmp.ne.s32.totalorder %s3201_s27, %s2354_s16  ;;  %s2358_s21 = sshll.u32 %s2421_s17, 4  ;;  %s2359_s21 = int_to_ptr.vmem [resolvable:$false] %s2358_s21 }
  0x21   : > { %s2360_s23 = scalar_lea.vmem %s2359_s21, 32  ;;  %p2361_p0 = scmp.lt.s32.totalorder %s3201_s27, %s2359_s21 }
  0x22   : > { %p2356_p12 = pnand %p2355_p11, %p2510_p5  ;;  %p2362_p1 = scmp.lt.s32.totalorder %s2360_s23, %s2354_s16 }
  0x23   : > { %2095 = vmatpush3.bf16.msra.mxu1 %v2171_v8  ;;  %v2779_v8 = vld [vmem:[%s3246_s5 + $0xe0] ss:$16 sps:$4 sm:$0xff]  }
  0x24   : > { %2096 = vmatprep.subr.bf16.mxu1 %v2418_v1  ;;  %p2357_p13 = pneg %p2356_p12  ;;  %p2363_p2 = por %p2362_p1, %p2361_p0 }
  0x26   : > { %p2364_p3 = pnand %p2363_p2, %p2357_p13 }
  0x27   : > { %2097 = vmatpush3.bf16.msra.mxu1 %v2172_v9  ;;  %v2784_v9 = vld [vmem:[%s3246_s5 + $0xe8] ss:$16 sps:$4 sm:$0xff]  }
  0x28   : > { %2098 = vmatprep.subr.bf16.mxu1 %v2418_v1 }
  0x2b   : > { %2099 = vmatpush3.bf16.msra.mxu1 %v2173_v10 }
  0x2c   : > { %629 = vmatprep.subr.bf16.mxu1 %v2178_v13 }
  0x2e   : > { %2101 = vmatmul.mubr.msk.bf16.vlgmr.msra.gmra.mrb[4].mxu1 %vm362_vm1, %v329_v7  ;;  %v2772_v7 = vld [vmem:[%s3246_s5 + $0xec] ss:$16 sps:$4 sm:$0xff]  }
  0x2f   : > { %630 = vmatpush1.bf16.msra.mxu1 %v2176_v12  ;;  %661 = vmatprep.mubr.bf16.mxu1 %v2420_v29 }
  0x30   : > { %631 = vmatprep.subr.bf16.mxu1 %v2184_v16 }
  0x33   : > { %632 = vmatpush1.bf16.msra.mxu1 %v2182_v17 }
  0x34   : > { %2016 = vmatprep.subr.msk.bf16.mxu1 %vm575_vm2, %v2013_v22  ;;  %v507_v22 = vsub.s32 1, %v502_v19 }
  0x36   : > { %v508_v25 = vrot.slane %v499_v21, %v507_v22 }
  0x37   : > { %634 = vmatpush1.bf16.msra.mxu1 %v583_v26  ;;  %v512_v26 = vrot.slane %v499_v21, %v511_v23 }
  0x38   : > { %903 = vmatprep.subr.bf16.mxu1 %v2599_v28 }
  0xf1   : > { %v400_v30 = vpop.f32.mrb[0].mxu1 }
  0xf2   : > { %v2090_v31 = vpop.f32.mrb[1].mxu1 }
  0xf3   : > { %v403_v32 = vpop.f32.mrb[2].mxu1 }
  0xf4   : > { %v2091_v33 = vpop.f32.mrb[3].mxu1 }
 0x101   : > { %v472_v34 = vpop.f32.mrb[4].mxu1 }
 0x102   : > { %v478_v36 = vmax.f32 %v400_v30, %v472_v34  ;;  %v2102_v37 = vpop.f32.mrb[5].mxu1 }
 0x103   : > { %v475_v38 = vpop.f32.mrb[6].mxu1 }
 0x104   : > { %v486_v39 = vadd.f32 %v2001_v35, %v478_v36  ;;  %v2103_v40 = vpop.f32.mrb[7].mxu1  ;;  %v515_v38 = vsub.s32 3, %v502_v19 }
 0x106   : > { %v487_v41 = vmax.f32 %v486_v39, 0.0 }
 0x108   : > { %v488_v44 = vpack.c.bf16 %v487_v41, %v487_v41 }
 0x10a   : > { %2015 = vmatmul.mubr.msk.bf16.vlgmr.msra.gmra.mrb[0].mxu0 %vm571_vm3, %v488_v44  ;;  %2017 = vmatmul.mubr.msk.bf16.vlgmr.msra.gmra.mrb[8].mxu1 %vm571_vm3, %v488_v44 }
 0x10b   : > { %863 = vmatpush1.bf16.msra.mxu0 %v2611_v42  ;;  %904 = vmatpush1.bf16.msra.mxu1 %v2616_v43 }
 0x10c   : > { %864 = vmatprep.subr.bf16.mxu0 %v2621_v45  ;;  %905 = vmatprep.subr.bf16.mxu1 %v2626_v46 }
 0x10d   : > { %894 = vmatprep.mubr.bf16.mxu0 %v2420_v29  ;;  %935 = vmatprep.mubr.bf16.mxu1 %v2420_v29 }
 0x10f   : > { %865 = vmatpush1.bf16.msra.mxu0 %v2633_v47  ;;  %906 = vmatpush1.bf16.msra.mxu1 %v2638_v48 }
 0x110   : > { %866 = vmatprep.subr.bf16.mxu0 %v2645_v49  ;;  %907 = vmatprep.subr.bf16.mxu1 %v2650_v50 }
 0x113   : > { %867 = vmatpush1.bf16.msra.mxu0 %v2659_v51  ;;  %908 = vmatpush1.bf16.msra.mxu1 %v2664_v52 }
 0x114   : > { %868 = vmatprep.subr.bf16.mxu0 %v2671_v53  ;;  %909 = vmatprep.subr.bf16.mxu1 %v2676_v54 }
 0x117   : > { %869 = vmatpush1.bf16.msra.mxu0 %v2683_v55  ;;  %910 = vmatpush1.bf16.msra.mxu1 %v2688_v56 }
 0x118   : > { %870 = vmatprep.subr.bf16.mxu0 %v2695_v57  ;;  %911 = vmatprep.subr.bf16.mxu1 %v2700_v58 }
 0x11b   : > { %871 = vmatpush1.bf16.msra.mxu0 %v2707_v59  ;;  %912 = vmatpush1.bf16.msra.mxu1 %v2712_v60 }
 0x11c   : > { %872 = vmatprep.subr.bf16.mxu0 %v2719_v61  ;;  %913 = vmatprep.subr.bf16.mxu1 %v2724_v62 }
 0x11f   : > { %873 = vmatpush1.bf16.msra.mxu0 %v2731_v63  ;;  %914 = vmatpush1.bf16.msra.mxu1 %v2736_v0 }
 0x120   : > { %874 = vmatprep.subr.bf16.mxu0 %v2743_v2  ;;  %915 = vmatprep.subr.bf16.mxu1 %v2748_v3 }
 0x123   : > { %875 = vmatpush1.bf16.msra.mxu0 %v2755_v4  ;;  %916 = vmatpush1.bf16.msra.mxu1 %v2760_v5 }
 0x124   : > { %876 = vmatprep.subr.bf16.mxu0 %v2767_v6  ;;  %917 = vmatprep.subr.bf16.mxu1 %v2772_v7 }
 0x127   : > { %877 = vmatpush1.bf16.msra.mxu0 %v2779_v8  ;;  %918 = vmatpush1.bf16.msra.mxu1 %v2784_v9 }
 0x128   : > { %964 = vmatprep.subr.bf16.mxu0 %v2594_v27  ;;  %1005 = vmatprep.subr.bf16.mxu1 %v2599_v28 }
 0x12a   : > { %895 = vmatmul.mubr.bf16.vlgmr.msra.gmra.mrb[4].mxu0 %v2420_v29  ;;  %936 = vmatmul.mubr.bf16.vlgmr.msra.gmra.mrb[12].mxu1 %v2420_v29 }
 0x12b   : > { %965 = vmatpush1.bf16.msra.mxu0 %v2611_v42  ;;  %1006 = vmatpush1.bf16.msra.mxu1 %v2616_v43 }
 0x12c   : > { %966 = vmatprep.subr.bf16.mxu0 %v2621_v45  ;;  %1007 = vmatprep.subr.bf16.mxu1 %v2626_v46 }
 0x12d   : > { %996 = vmatprep.mubr.bf16.mxu0 %v2420_v29  ;;  %1037 = vmatprep.mubr.bf16.mxu1 %v2420_v29 }
 0x12f   : > { %967 = vmatpush1.bf16.msra.mxu0 %v2633_v47  ;;  %1008 = vmatpush1.bf16.msra.mxu1 %v2638_v48 }
 0x130   : > { %968 = vmatprep.subr.bf16.mxu0 %v2645_v49  ;;  %1009 = vmatprep.subr.bf16.mxu1 %v2650_v50 }
 0x133   : > { %969 = vmatpush1.bf16.msra.mxu0 %v2659_v51  ;;  %1010 = vmatpush1.bf16.msra.mxu1 %v2664_v52 }
 0x134   : > { %970 = vmatprep.subr.bf16.mxu0 %v2671_v53  ;;  %1011 = vmatprep.subr.bf16.mxu1 %v2676_v54 }
 0x137   : > { %971 = vmatpush1.bf16.msra.mxu0 %v2683_v55  ;;  %1012 = vmatpush1.bf16.msra.mxu1 %v2688_v56 }
 0x138   : > { %972 = vmatprep.subr.bf16.mxu0 %v2695_v57  ;;  %1013 = vmatprep.subr.bf16.mxu1 %v2700_v58 }
 0x13b   : > { %973 = vmatpush1.bf16.msra.mxu0 %v2707_v59  ;;  %1014 = vmatpush1.bf16.msra.mxu1 %v2712_v60 }
 0x13c   : > { %974 = vmatprep.subr.bf16.mxu0 %v2719_v61  ;;  %1015 = vmatprep.subr.bf16.mxu1 %v2724_v62 }
 0x13f   : > { %975 = vmatpush1.bf16.msra.mxu0 %v2731_v63  ;;  %1016 = vmatpush1.bf16.msra.mxu1 %v2736_v0 }
 0x140   : > { %976 = vmatprep.subr.bf16.mxu0 %v2743_v2  ;;  %1017 = vmatprep.subr.bf16.mxu1 %v2748_v3 }
 0x143   : > { %977 = vmatpush1.bf16.msra.mxu0 %v2755_v4  ;;  %1018 = vmatpush1.bf16.msra.mxu1 %v2760_v5 }
 0x144   : > { %978 = vmatprep.subr.bf16.mxu0 %v2767_v6  ;;  %1019 = vmatprep.subr.bf16.mxu1 %v2772_v7 }
 0x147   : > { %979 = vmatpush1.bf16.msra.mxu0 %v2779_v8  ;;  %1020 = vmatpush1.bf16.msra.mxu1 %v2784_v9 }
 0x148   : > { %1085 = vmatprep.subr.bf16.mxu0 %v2594_v27  ;;  %1126 = vmatprep.subr.bf16.mxu1 %v2599_v28 }
 0x1dd   : > { %v622_v10 = vpop.f32.mrb[0].mxu0  ;;  %v663_v11 = vpop.f32.mrb[8].mxu1 }
 0x1de   : > { %v624_v12 = vpop.f32.mrb[1].mxu0  ;;  %v665_v13 = vpop.f32.mrb[9].mxu1  ;;  %v2831_v30 = vadd.f32 %v622_v10, %v504_v24  ;;  %v2835_v34 = vadd.f32 %v663_v11, %v512_v26 }
 0x1df   : > { %v626_v14 = vpop.f32.mrb[2].mxu0  ;;  %v667_v15 = vpop.f32.mrb[10].mxu1  ;;  %v2833_v31 = vadd.f32 %v624_v12, %v508_v25  ;;  %v516_v12 = vrot.slane %v499_v21, %v515_v38 }
 0x1e0   : > { %v627_v16 = vpop.f32.mrb[3].mxu0  ;;  %v668_v17 = vpop.f32.mrb[11].mxu1 }
 0x1e1   : > { %v2840_v15 = vadd.f32 %v665_v13, %v516_v12 }
 0x1fd   : > { %v896_v32 = vpop.f32.mrb[4].mxu0  ;;  %v937_v33 = vpop.f32.mrb[12].mxu1 }
 0x1fe   : > { %v944_v35 = vadd.f32 %v896_v32, %v2831_v30  ;;  %v898_v36 = vpop.f32.mrb[5].mxu0  ;;  %v939_v37 = vpop.f32.mrb[13].mxu1  ;;  %v946_v44 = vadd.f32 %v937_v33, %v2835_v34 }
 0x1ff   : > { %v945_v39 = vadd.f32 %v898_v36, %v2833_v31  ;;  %v900_v40 = vpop.f32.mrb[6].mxu0  ;;  %v941_v41 = vpop.f32.mrb[14].mxu1  ;;  %v947_v11 = vadd.f32 %v939_v37, %v2840_v15 }
 0x200   : > { %2246 = vtanh.f32 %v944_v35  ;;  %v901_v10 = vpop.f32.mrb[7].mxu0  ;;  %v942_v14 = vpop.f32.mrb[15].mxu1 }
 0x201   : > { %2248 = vtanh.f32 %v945_v39 }
 0x202   : > { %2250 = vtanh.f32 %v946_v44 }
 0x203   : > { %2252 = vtanh.f32 %v947_v11 }
 0x20a   : > { %v2247_v16 = vpop.eup %2246 }
 0x20b   : > { %v952_v17 = vmul.f32 0.5, %v2247_v16  ;;  %v2249_v18 = vpop.eup %2248 }
 0x20c   : > { %v954_v20 = vmul.f32 0.5, %v2249_v18  ;;  %v2251_v22 = vpop.eup %2250 }
 0x20d   : > { %v953_v19 = vadd.f32 0.5, %v952_v17  ;;  %v2253_v21 = vpop.eup %2252 }
 0x20e   : > { %v955_v23 = vadd.f32 0.5, %v954_v20  ;;  %v956_v32 = vmul.f32 0.5, %v2253_v21 }
 0x20f   : > { %v959_v24 = vmul.f32 %v2251_v22, %v953_v19 }
 0x210   : > { %v958_v25 = vmul.f32 0.0, %v955_v23  ;;  %v957_v13 = vadd.f32 0.5, %v956_v32 }
 0x212   : > { %v2843_v26 = vadd.f32 %v959_v24, %v958_v25 }
 0x214   : > { %2254 = vtanh.f32 %v2843_v26 }
 0x21e   : > { %v2255_v33 = vpop.eup %2254 }
 0x21f   : > { %v962_v35 = vmul.f32 %v2255_v33, %v957_v13  ;;  %v1073_v33 = vrot.slane %v2843_v26, 7 }
 0x221   : > { %v963_v36 = vpack.c.bf16 %v962_v35, %v962_v35 }
 0x223   : > { %997 = vmatmul.mubr.bf16.vlgmr.msra.gmra.mrb[8].mxu0 %v963_v36  ;;  %1038 = vmatmul.mubr.bf16.vlgmr.msra.gmra.mrb[16].mxu1 %v963_v36 }
 0x224   : > { %1086 = vmatpush1.bf16.msra.mxu0 %v2611_v42  ;;  %1127 = vmatpush1.bf16.msra.mxu1 %v2616_v43 }
 0x225   : > { %1087 = vmatprep.subr.bf16.mxu0 %v2621_v45  ;;  %1128 = vmatprep.subr.bf16.mxu1 %v2626_v46 }
 0x226   : > { %1117 = vmatprep.mubr.bf16.mxu0 %v2420_v29  ;;  %1158 = vmatprep.mubr.bf16.mxu1 %v2420_v29 }
 0x228   : > { %1088 = vmatpush1.bf16.msra.mxu0 %v2633_v47  ;;  %1129 = vmatpush1.bf16.msra.mxu1 %v2638_v48 }
 0x229   : > { %1089 = vmatprep.subr.bf16.mxu0 %v2645_v49  ;;  %1130 = vmatprep.subr.bf16.mxu1 %v2650_v50 }
 0x22c   : > { %1090 = vmatpush1.bf16.msra.mxu0 %v2659_v51  ;;  %1131 = vmatpush1.bf16.msra.mxu1 %v2664_v52 }
 0x22d   : > { %1091 = vmatprep.subr.bf16.mxu0 %v2671_v53  ;;  %1132 = vmatprep.subr.bf16.mxu1 %v2676_v54 }
 0x230   : > { %1092 = vmatpush1.bf16.msra.mxu0 %v2683_v55  ;;  %1133 = vmatpush1.bf16.msra.mxu1 %v2688_v56 }
 0x231   : > { %1093 = vmatprep.subr.bf16.mxu0 %v2695_v57  ;;  %1134 = vmatprep.subr.bf16.mxu1 %v2700_v58 }
 0x234   : > { %1094 = vmatpush1.bf16.msra.mxu0 %v2707_v59  ;;  %1135 = vmatpush1.bf16.msra.mxu1 %v2712_v60 }
 0x235   : > { %1095 = vmatprep.subr.bf16.mxu0 %v2719_v61  ;;  %1136 = vmatprep.subr.bf16.mxu1 %v2724_v62 }
 0x238   : > { %1096 = vmatpush1.bf16.msra.mxu0 %v2731_v63  ;;  %1137 = vmatpush1.bf16.msra.mxu1 %v2736_v0 }
 0x239   : > { %1097 = vmatprep.subr.bf16.mxu0 %v2743_v2  ;;  %1138 = vmatprep.subr.bf16.mxu1 %v2748_v3 }
 0x23c   : > { %1098 = vmatpush1.bf16.msra.mxu0 %v2755_v4  ;;  %1139 = vmatpush1.bf16.msra.mxu1 %v2760_v5 }
 0x23d   : > { %1099 = vmatprep.subr.bf16.mxu0 %v2767_v6  ;;  %1140 = vmatprep.subr.bf16.mxu1 %v2772_v7 }
 0x240   : > { %1100 = vmatpush1.bf16.msra.mxu0 %v2779_v8  ;;  %1141 = vmatpush1.bf16.msra.mxu1 %v2784_v9 }
 0x241   : > { %1205 = vmatprep.subr.bf16.mxu0 %v2594_v27  ;;  %1246 = vmatprep.subr.bf16.mxu1 %v2599_v28 }
 0x2f6   : > { %v998_v37 = vpop.f32.mrb[8].mxu0  ;;  %v1039_v38 = vpop.f32.mrb[16].mxu1 }
 0x2f7   : > { %v1050_v39 = vrot.slane %v998_v37, 7  ;;  %v1052_v40 = vrot.slane %v1039_v38, 7  ;;  %v1000_v41 = vpop.f32.mrb[9].mxu0  ;;  %v1041_v44 = vpop.f32.mrb[17].mxu1 }
 0x2f8   : > { %v1051_v10 = vrot.slane %v1000_v41, 7  ;;  %v1002_v14 = vpop.f32.mrb[10].mxu0  ;;  %v1043_v12 = vpop.f32.mrb[18].mxu1  ;;  %v1053_v20 = vrot.slane %v1041_v44, 7 }
 0x2f9   : > { %v1058_v11 = vadd.f32 %v1050_v39, %v2831_v30  ;;  %v1003_v16 = vpop.f32.mrb[11].mxu0  ;;  %v1044_v17 = vpop.f32.mrb[19].mxu1  ;;  %v1060_v19 = vadd.f32 %v1052_v40, %v2835_v34 }
 0x2fa   : > { %v1059_v18 = vadd.f32 %v1051_v10, %v2833_v31  ;;  %v1061_v22 = vadd.f32 %v1053_v20, %v2840_v15 }
 0x2fb   : > { %2256 = vtanh.f32 %v1058_v11 }
 0x2fc   : > { %2258 = vtanh.f32 %v1059_v18 }
 0x2fd   : > { %2260 = vtanh.f32 %v1060_v19 }
 0x2fe   : > { %2262 = vtanh.f32 %v1061_v22 }
 0x305   : > { %v2257_v23 = vpop.eup %2256 }
 0x306   : > { %v1066_v24 = vmul.f32 0.5, %v2257_v23  ;;  %v2259_v25 = vpop.eup %2258 }
 0x307   : > { %v1068_v32 = vmul.f32 0.5, %v2259_v25  ;;  %v2261_v13 = vpop.eup %2260 }
 0x308   : > { %v1067_v21 = vadd.f32 0.5, %v1066_v24  ;;  %v2263_v39 = vpop.eup %2262 }
 0x309   : > { %v1069_v35 = vadd.f32 0.5, %v1068_v32  ;;  %v1070_v40 = vmul.f32 0.5, %v2263_v39 }
 0x30a   : > { %v1076_v36 = vmul.f32 %v2261_v13, %v1067_v21 }
 0x30b   : > { %v1075_v37 = vmul.f32 %v1073_v33, %v1069_v35  ;;  %v1071_v41 = vadd.f32 0.5, %v1070_v40 }
 0x30d   : > { %v2885_v38 = vadd.f32 %v1076_v36, %v1075_v37 }
 0x30f   : > { %2264 = vtanh.f32 %v2885_v38 }
 0x319   : > { %v2265_v44 = vpop.eup %2264 }
 0x31a   : > { %v1079_v10 = vmul.f32 %v2265_v44, %v1071_v41 }
 0x31c   : > { %v1080_v14 = vpack.c.bf16 %v1079_v10, %v1079_v10 }
 0x31e   : > { %v1082_v12 = vshrl.u32 %v1080_v14, 16  ;;  %v1194_v14 = vrot.slane %v2885_v38, 7 }
 0x320   : > { %1118 = vmatmul.mubr.bf16.vlgmr.msra.gmra.mrb[12].mxu0 %v1082_v12  ;;  %1159 = vmatmul.mubr.bf16.vlgmr.msra.gmra.mrb[20].mxu1 %v1082_v12 }
 0x321   : > { %1206 = vmatpush1.bf16.msra.mxu0 %v2611_v42  ;;  %1247 = vmatpush1.bf16.msra.mxu1 %v2616_v43 }
 0x322   : > { %1207 = vmatprep.subr.bf16.mxu0 %v2621_v45  ;;  %1248 = vmatprep.subr.bf16.mxu1 %v2626_v46 }
 0x323   : > { %1237 = vmatprep.mubr.bf16.mxu0 %v2420_v29  ;;  %1278 = vmatprep.mubr.bf16.mxu1 %v2420_v29 }
 0x325   : > { %1208 = vmatpush1.bf16.msra.mxu0 %v2633_v47  ;;  %1249 = vmatpush1.bf16.msra.mxu1 %v2638_v48 }
 0x326   : > { %1209 = vmatprep.subr.bf16.mxu0 %v2645_v49  ;;  %1250 = vmatprep.subr.bf16.mxu1 %v2650_v50 }
 0x329   : > { %1210 = vmatpush1.bf16.msra.mxu0 %v2659_v51  ;;  %1251 = vmatpush1.bf16.msra.mxu1 %v2664_v52 }
 0x32a   : > { %1211 = vmatprep.subr.bf16.mxu0 %v2671_v53  ;;  %1252 = vmatprep.subr.bf16.mxu1 %v2676_v54 }
 0x32d   : > { %1212 = vmatpush1.bf16.msra.mxu0 %v2683_v55  ;;  %1253 = vmatpush1.bf16.msra.mxu1 %v2688_v56 }
 0x32e   : > { %1213 = vmatprep.subr.bf16.mxu0 %v2695_v57  ;;  %1254 = vmatprep.subr.bf16.mxu1 %v2700_v58 }
 0x331   : > { %1214 = vmatpush1.bf16.msra.mxu0 %v2707_v59  ;;  %1255 = vmatpush1.bf16.msra.mxu1 %v2712_v60 }
 0x332   : > { %1215 = vmatprep.subr.bf16.mxu0 %v2719_v61  ;;  %1256 = vmatprep.subr.bf16.mxu1 %v2724_v62 }
 0x335   : > { %1216 = vmatpush1.bf16.msra.mxu0 %v2731_v63  ;;  %1257 = vmatpush1.bf16.msra.mxu1 %v2736_v0 }
 0x336   : > { %1217 = vmatprep.subr.bf16.mxu0 %v2743_v2  ;;  %1258 = vmatprep.subr.bf16.mxu1 %v2748_v3 }
 0x339   : > { %1218 = vmatpush1.bf16.msra.mxu0 %v2755_v4  ;;  %1259 = vmatpush1.bf16.msra.mxu1 %v2760_v5 }
 0x33a   : > { %1219 = vmatprep.subr.bf16.mxu0 %v2767_v6  ;;  %1260 = vmatprep.subr.bf16.mxu1 %v2772_v7 }
 0x33d   : > { %1220 = vmatpush1.bf16.msra.mxu0 %v2779_v8  ;;  %1261 = vmatpush1.bf16.msra.mxu1 %v2784_v9 }
 0x33e   : > { %1327 = vmatprep.subr.bf16.mxu0 %v2594_v27  ;;  %1368 = vmatprep.subr.bf16.mxu1 %v2599_v28 }
 0x3f3   : > { %v1119_v26 = vpop.f32.mrb[12].mxu0  ;;  %v1160_v11 = vpop.f32.mrb[20].mxu1 }
 0x3f4   : > { %v1171_v16 = vrot.slane %v1119_v26, 6  ;;  %v1173_v17 = vrot.slane %v1160_v11, 6  ;;  %v1121_v18 = vpop.f32.mrb[13].mxu0  ;;  %v1162_v19 = vpop.f32.mrb[21].mxu1 }
 0x3f5   : > { %v1172_v20 = vrot.slane %v1121_v18, 6  ;;  %v1123_v22 = vpop.f32.mrb[14].mxu0  ;;  %v1164_v23 = vpop.f32.mrb[22].mxu1  ;;  %v1174_v33 = vrot.slane %v1162_v19, 6 }
 0x3f6   : > { %v1179_v24 = vadd.f32 %v1171_v16, %v2831_v30  ;;  %v1124_v25 = vpop.f32.mrb[15].mxu0  ;;  %v1165_v21 = vpop.f32.mrb[23].mxu1  ;;  %v1181_v13 = vadd.f32 %v1173_v17, %v2835_v34 }
 0x3f7   : > { %v1180_v32 = vadd.f32 %v1172_v20, %v2833_v31  ;;  %v1182_v35 = vadd.f32 %v1174_v33, %v2840_v15 }
 0x3f8   : > { %2266 = vtanh.f32 %v1179_v24 }
 0x3f9   : > { %2268 = vtanh.f32 %v1180_v32 }
 0x3fa   : > { %2270 = vtanh.f32 %v1181_v13 }
 0x3fb   : > { %2272 = vtanh.f32 %v1182_v35 }
 0x402   : > { %v2267_v36 = vpop.eup %2266 }
 0x403   : > { %v1187_v37 = vmul.f32 0.5, %v2267_v36  ;;  %v2269_v39 = vpop.eup %2268 }
 0x404   : > { %v1189_v41 = vmul.f32 0.5, %v2269_v39  ;;  %v2271_v44 = vpop.eup %2270 }
 0x405   : > { %v1188_v40 = vadd.f32 0.5, %v1187_v37  ;;  %v2273_v16 = vpop.eup %2272 }
 0x406   : > { %v1190_v10 = vadd.f32 0.5, %v1189_v41  ;;  %v1191_v17 = vmul.f32 0.5, %v2273_v16 }
 0x407   : > { %v1197_v12 = vmul.f32 %v2271_v44, %v1188_v40 }
 0x408   : > { %v1196_v26 = vmul.f32 %v1194_v14, %v1190_v10  ;;  %v1192_v18 = vadd.f32 0.5, %v1191_v17 }
 0x40a   : > { %v2927_v11 = vadd.f32 %v1197_v12, %v1196_v26 }
 0x40c   : > { %2274 = vtanh.f32 %v2927_v11 }
 0x416   : > { %v2275_v19 = vpop.eup %2274 }
 0x417   : > { %v1200_v20 = vmul.f32 %v2275_v19, %v1192_v18 }
 0x419   : > { %v1201_v22 = vpack.c.bf16 %v1200_v20, %v1200_v20 }
 0x41b   : > { %v1203_v23 = vrot.slane %v1201_v22, 1  ;;  %v1314_v22 = vrot.slane %v2927_v11, 7 }
 0x41d   : > { %1238 = vmatmul.mubr.bf16.vlgmr.msra.gmra.mrb[16].mxu0 %v1203_v23  ;;  %1279 = vmatmul.mubr.bf16.vlgmr.msra.gmra.mrb[24].mxu1 %v1203_v23 }
 0x41e   : > { %1328 = vmatpush1.bf16.msra.mxu0 %v2611_v42  ;;  %1369 = vmatpush1.bf16.msra.mxu1 %v2616_v43 }
 0x41f   : > { %1329 = vmatprep.subr.bf16.mxu0 %v2621_v45  ;;  %1370 = vmatprep.subr.bf16.mxu1 %v2626_v46 }
 0x420   : > { %1359 = vmatprep.mubr.bf16.mxu0 %v2420_v29  ;;  %1400 = vmatprep.mubr.bf16.mxu1 %v2420_v29 }
 0x422   : > { %1330 = vmatpush1.bf16.msra.mxu0 %v2633_v47  ;;  %1371 = vmatpush1.bf16.msra.mxu1 %v2638_v48 }
 0x423   : > { %1331 = vmatprep.subr.bf16.mxu0 %v2645_v49  ;;  %1372 = vmatprep.subr.bf16.mxu1 %v2650_v50 }
 0x426   : > { %1332 = vmatpush1.bf16.msra.mxu0 %v2659_v51  ;;  %1373 = vmatpush1.bf16.msra.mxu1 %v2664_v52 }
 0x427   : > { %1333 = vmatprep.subr.bf16.mxu0 %v2671_v53  ;;  %1374 = vmatprep.subr.bf16.mxu1 %v2676_v54 }
 0x42a   : > { %1334 = vmatpush1.bf16.msra.mxu0 %v2683_v55  ;;  %1375 = vmatpush1.bf16.msra.mxu1 %v2688_v56 }
 0x42b   : > { %1335 = vmatprep.subr.bf16.mxu0 %v2695_v57  ;;  %1376 = vmatprep.subr.bf16.mxu1 %v2700_v58 }
 0x42e   : > { %1336 = vmatpush1.bf16.msra.mxu0 %v2707_v59  ;;  %1377 = vmatpush1.bf16.msra.mxu1 %v2712_v60 }
 0x42f   : > { %1337 = vmatprep.subr.bf16.mxu0 %v2719_v61  ;;  %1378 = vmatprep.subr.bf16.mxu1 %v2724_v62 }
 0x432   : > { %1338 = vmatpush1.bf16.msra.mxu0 %v2731_v63  ;;  %1379 = vmatpush1.bf16.msra.mxu1 %v2736_v0 }
 0x433   : > { %1339 = vmatprep.subr.bf16.mxu0 %v2743_v2  ;;  %1380 = vmatprep.subr.bf16.mxu1 %v2748_v3 }
 0x436   : > { %1340 = vmatpush1.bf16.msra.mxu0 %v2755_v4  ;;  %1381 = vmatpush1.bf16.msra.mxu1 %v2760_v5 }
 0x437   : > { %1341 = vmatprep.subr.bf16.mxu0 %v2767_v6  ;;  %1382 = vmatprep.subr.bf16.mxu1 %v2772_v7 }
 0x43a   : > { %1342 = vmatpush1.bf16.msra.mxu0 %v2779_v8  ;;  %1383 = vmatpush1.bf16.msra.mxu1 %v2784_v9 }
 0x43b   : > { %1447 = vmatprep.subr.bf16.mxu0 %v2594_v27  ;;  %1488 = vmatprep.subr.bf16.mxu1 %v2599_v28 }
 0x4f0   : > { %v1239_v38 = vpop.f32.mrb[16].mxu0  ;;  %v1280_v24 = vpop.f32.mrb[24].mxu1 }
 0x4f1   : > { %v1291_v25 = vrot.slane %v1239_v38, 5  ;;  %v1293_v21 = vrot.slane %v1280_v24, 5  ;;  %v1241_v32 = vpop.f32.mrb[17].mxu0  ;;  %v1282_v13 = vpop.f32.mrb[25].mxu1 }
 0x4f2   : > { %v1292_v33 = vrot.slane %v1241_v32, 5  ;;  %v1243_v35 = vpop.f32.mrb[18].mxu0  ;;  %v1284_v36 = vpop.f32.mrb[26].mxu1  ;;  %v1294_v10 = vrot.slane %v1282_v13, 5 }
 0x4f3   : > { %v1299_v37 = vadd.f32 %v1291_v25, %v2831_v30  ;;  %v1244_v39 = vpop.f32.mrb[19].mxu0  ;;  %v1285_v40 = vpop.f32.mrb[27].mxu1  ;;  %v1301_v44 = vadd.f32 %v1293_v21, %v2835_v34 }
 0x4f4   : > { %v1300_v41 = vadd.f32 %v1292_v33, %v2833_v31  ;;  %v1302_v14 = vadd.f32 %v1294_v10, %v2840_v15 }
 0x4f5   : > { %2276 = vtanh.f32 %v1299_v37 }
 0x4f6   : > { %2278 = vtanh.f32 %v1300_v41 }
 0x4f7   : > { %2280 = vtanh.f32 %v1301_v44 }
 0x4f8   : > { %2282 = vtanh.f32 %v1302_v14 }
 0x4ff   : > { %v2277_v12 = vpop.eup %2276 }
 0x500   : > { %v1307_v26 = vmul.f32 0.5, %v2277_v12  ;;  %v2279_v16 = vpop.eup %2278 }
 0x501   : > { %v1309_v18 = vmul.f32 0.5, %v2279_v16  ;;  %v2281_v19 = vpop.eup %2280 }
 0x502   : > { %v1308_v17 = vadd.f32 0.5, %v1307_v26  ;;  %v2283_v25 = vpop.eup %2282 }
 0x503   : > { %v1310_v20 = vadd.f32 0.5, %v1309_v18  ;;  %v1311_v21 = vmul.f32 0.5, %v2283_v25 }
 0x504   : > { %v1317_v23 = vmul.f32 %v2281_v19, %v1308_v17 }
 0x505   : > { %v1316_v38 = vmul.f32 %v1314_v22, %v1310_v20  ;;  %v1312_v32 = vadd.f32 0.5, %v1311_v21 }
 0x507   : > { %v2969_v24 = vadd.f32 %v1317_v23, %v1316_v38 }
 0x509   : > { %2284 = vtanh.f32 %v2969_v24 }
 0x513   : > { %v2285_v13 = vpop.eup %2284 }
 0x514   : > { %v1320_v33 = vmul.f32 %v2285_v13, %v1312_v32 }
 0x516   : > { %v1321_v35 = vpack.c.bf16 %v1320_v33, %v1320_v33  ;;  %v1436_v33 = vrot.slane %v2969_v24, 7 }
 0x518   : > { %v1323_v36 = vshrl.u32 %v1321_v35, 16 }
 0x51a   : > { %v1325_v37 = vrot.slane %v1323_v36, 1 }
 0x51c   : > { %1360 = vmatmul.mubr.bf16.vlgmr.msra.gmra.mrb[20].mxu0 %v1325_v37  ;;  %1401 = vmatmul.mubr.bf16.vlgmr.msra.gmra.mrb[28].mxu1 %v1325_v37 }
 0x51d   : > { %1448 = vmatpush1.bf16.msra.mxu0 %v2611_v42  ;;  %1489 = vmatpush1.bf16.msra.mxu1 %v2616_v43 }
 0x51e   : > { %1449 = vmatprep.subr.bf16.mxu0 %v2621_v45  ;;  %1490 = vmatprep.subr.bf16.mxu1 %v2626_v46 }
 0x51f   : > { %1479 = vmatprep.mubr.bf16.mxu0 %v2420_v29  ;;  %1520 = vmatprep.mubr.bf16.mxu1 %v2420_v29 }
 0x521   : > { %1450 = vmatpush1.bf16.msra.mxu0 %v2633_v47  ;;  %1491 = vmatpush1.bf16.msra.mxu1 %v2638_v48 }
 0x522   : > { %1451 = vmatprep.subr.bf16.mxu0 %v2645_v49  ;;  %1492 = vmatprep.subr.bf16.mxu1 %v2650_v50 }
 0x525   : > { %1452 = vmatpush1.bf16.msra.mxu0 %v2659_v51  ;;  %1493 = vmatpush1.bf16.msra.mxu1 %v2664_v52 }
 0x526   : > { %1453 = vmatprep.subr.bf16.mxu0 %v2671_v53  ;;  %1494 = vmatprep.subr.bf16.mxu1 %v2676_v54 }
 0x529   : > { %1454 = vmatpush1.bf16.msra.mxu0 %v2683_v55  ;;  %1495 = vmatpush1.bf16.msra.mxu1 %v2688_v56 }
 0x52a   : > { %1455 = vmatprep.subr.bf16.mxu0 %v2695_v57  ;;  %1496 = vmatprep.subr.bf16.mxu1 %v2700_v58 }
 0x52d   : > { %1456 = vmatpush1.bf16.msra.mxu0 %v2707_v59  ;;  %1497 = vmatpush1.bf16.msra.mxu1 %v2712_v60 }
 0x52e   : > { %1457 = vmatprep.subr.bf16.mxu0 %v2719_v61  ;;  %1498 = vmatprep.subr.bf16.mxu1 %v2724_v62 }
 0x531   : > { %1458 = vmatpush1.bf16.msra.mxu0 %v2731_v63  ;;  %1499 = vmatpush1.bf16.msra.mxu1 %v2736_v0 }
 0x532   : > { %1459 = vmatprep.subr.bf16.mxu0 %v2743_v2  ;;  %1500 = vmatprep.subr.bf16.mxu1 %v2748_v3 }
 0x535   : > { %1460 = vmatpush1.bf16.msra.mxu0 %v2755_v4  ;;  %1501 = vmatpush1.bf16.msra.mxu1 %v2760_v5 }
 0x536   : > { %1461 = vmatprep.subr.bf16.mxu0 %v2767_v6  ;;  %1502 = vmatprep.subr.bf16.mxu1 %v2772_v7 }
 0x539   : > { %1462 = vmatpush1.bf16.msra.mxu0 %v2779_v8  ;;  %1503 = vmatpush1.bf16.msra.mxu1 %v2784_v9 }
 0x53a   : > { %1569 = vmatprep.subr.bf16.mxu0 %v2594_v27  ;;  %1610 = vmatprep.subr.bf16.mxu1 %v2599_v28 }
 0x5ef   : > { %v1361_v11 = vpop.f32.mrb[20].mxu0  ;;  %v1402_v39 = vpop.f32.mrb[28].mxu1 }
 0x5f0   : > { %v1413_v40 = vrot.slane %v1361_v11, 4  ;;  %v1415_v41 = vrot.slane %v1402_v39, 4  ;;  %v1363_v44 = vpop.f32.mrb[21].mxu0  ;;  %v1404_v10 = vpop.f32.mrb[29].mxu1 }
 0x5f1   : > { %v1414_v14 = vrot.slane %v1363_v44, 4  ;;  %v1365_v12 = vpop.f32.mrb[22].mxu0  ;;  %v1406_v26 = vpop.f32.mrb[30].mxu1  ;;  %v1416_v28 = vrot.slane %v1404_v10, 4 }
 0x5f2   : > { %v1421_v16 = vadd.f32 %v1413_v40, %v2831_v30  ;;  %v1366_v17 = vpop.f32.mrb[23].mxu0  ;;  %v1407_v18 = vpop.f32.mrb[31].mxu1  ;;  %v1423_v27 = vadd.f32 %v1415_v41, %v2835_v34 }
 0x5f3   : > { %v1422_v19 = vadd.f32 %v1414_v14, %v2833_v31  ;;  %v1424_v20 = vadd.f32 %v1416_v28, %v2840_v15 }
 0x5f4   : > { %2286 = vtanh.f32 %v1421_v16 }
 0x5f5   : > { %2288 = vtanh.f32 %v1422_v19 }
 0x5f6   : > { %2290 = vtanh.f32 %v1423_v27 }
 0x5f7   : > { %2292 = vtanh.f32 %v1424_v20 }
 0x5fe   : > { %v2287_v22 = vpop.eup %2286 }
 0x5ff   : > { %v1429_v23 = vmul.f32 0.5, %v2287_v22  ;;  %v2289_v38 = vpop.eup %2288 }
 0x600   : > { %v1431_v21 = vmul.f32 0.5, %v2289_v38  ;;  %v2291_v32 = vpop.eup %2290  ;;  %v2329_v38 = vld [vmem:[%s3246_s5 + $0x8] ss:$16 sps:$4 sm:$0xff]  }
 0x601   : > { %v1430_v25 = vadd.f32 0.5, %v1429_v23  ;;  %v2293_v11 = vpop.eup %2292  ;;  %v2328_v23 = vld [vmem:[%s3246_s5] ss:$16 sps:$4 sm:$0xff]  }
 0x602   : > { %v1432_v13 = vadd.f32 0.5, %v1431_v21  ;;  %v1433_v39 = vmul.f32 0.5, %v2293_v11  ;;  %v2331_v21 = vld [vmem:[%s3246_s5 + $0x2c] ss:$16 sps:$4 sm:$0xff]  }
 0x603   : > { %v1439_v35 = vmul.f32 %v2291_v32, %v1430_v25  ;;  %v2330_v25 = vld [vmem:[%s3246_s5 + $0x24] ss:$16 sps:$4 sm:$0xff]   ;;  %v2332_v32 = vld [vmem:[%s3246_s5 + $0x20] ss:$16 sps:$4 sm:$0xff]   ;;  %v2339_v11 = vld [vmem:[%s3246_s5 + $0x6c] ss:$16 sps:$4 sm:$0xff]  }
 0x604   : > { %v1438_v36 = vmul.f32 %v1436_v33, %v1432_v13  ;;  %v1434_v40 = vadd.f32 0.5, %v1433_v39  ;;  %v2333_v13 = vld [vmem:[%s3246_s5 + $0x28] ss:$16 sps:$4 sm:$0xff]   ;;  %v2334_v33 = vld [vmem:[%s3246_s5 + $0x44] ss:$16 sps:$4 sm:$0xff]  }
 0x605   : > { %v2340_v39 = vld [vmem:[%s3246_s5 + $0x60] ss:$16 sps:$4 sm:$0xff]  }
 0x606   : > { %v3011_v37 = vadd.f32 %v1439_v35, %v1438_v36  ;;  %v2335_v35 = vld [vmem:[%s3246_s5 + $0x4c] ss:$16 sps:$4 sm:$0xff]   ;;  %v2337_v36 = vld [vmem:[%s3246_s5 + $0x48] ss:$16 sps:$4 sm:$0xff]  }
 0x608   : > { %2294 = vtanh.f32 %v3011_v37 }
 0x612   : > { %v2295_v41 = vpop.eup %2294 }
 0x613   : > { %v1442_v44 = vmul.f32 %v2295_v41, %v1434_v40  ;;  %v2341_v40 = vld [vmem:[%s3246_s5 + $0x68] ss:$16 sps:$4 sm:$0xff]   ;;  %v2342_v41 = vld [vmem:[%s3246_s5 + $0x84] ss:$16 sps:$4 sm:$0xff]  }
 0x615   : > { %v1443_v10 = vpack.c.bf16 %v1442_v44, %v1442_v44  ;;  %v2343_v44 = vld [vmem:[%s3246_s5 + $0x8c] ss:$16 sps:$4 sm:$0xff]  }
 0x617   : > { %v1445_v14 = vrot.slane %v1443_v10, 2  ;;  %v2344_v10 = vld [vmem:[%s3246_s5 + $0x80] ss:$16 sps:$4 sm:$0xff]  }
 0x619   : > { %1480 = vmatmul.mubr.bf16.vlgmr.msra.gmra.mrb[24].mxu0 %v1445_v14  ;;  %1521 = vmatmul.mubr.bf16.vlgmr.msra.gmra.mrb[32].mxu1 %v1445_v14  ;;  %v2345_v14 = vld [vmem:[%s3246_s5 + $0x88] ss:$16 sps:$4 sm:$0xff]  }
 0x61a   : > { %1570 = vmatpush1.bf16.msra.mxu0 %v2611_v42  ;;  %1611 = vmatpush1.bf16.msra.mxu1 %v2616_v43  ;;  %v2326_v42 = vld [vmem:[%s3246_s5 + $0x4] ss:$16 sps:$4 sm:$0xff]   ;;  %v2327_v43 = vld [vmem:[%s3246_s5 + $0xc] ss:$16 sps:$4 sm:$0xff]  }
 0x61b   : > { %1571 = vmatprep.subr.bf16.mxu0 %v2621_v45  ;;  %1612 = vmatprep.subr.bf16.mxu1 %v2626_v46 }
 0x61c   : > { %1601 = vmatprep.mubr.bf16.mxu0 %v2420_v29  ;;  %1642 = vmatprep.mubr.bf16.mxu1 %v2420_v29 }
 0x61e   : > { %1572 = vmatpush1.bf16.msra.mxu0 %v2633_v47  ;;  %1613 = vmatpush1.bf16.msra.mxu1 %v2638_v48 }
 0x61f   : > { %1573 = vmatprep.subr.bf16.mxu0 %v2645_v49  ;;  %1614 = vmatprep.subr.bf16.mxu1 %v2650_v50 }
 0x622   : > { %1574 = vmatpush1.bf16.msra.mxu0 %v2659_v51  ;;  %1615 = vmatpush1.bf16.msra.mxu1 %v2664_v52 }
 0x623   : > { %1575 = vmatprep.subr.bf16.mxu0 %v2671_v53  ;;  %1616 = vmatprep.subr.bf16.mxu1 %v2676_v54 }
 0x626   : > { %1576 = vmatpush1.bf16.msra.mxu0 %v2683_v55  ;;  %1617 = vmatpush1.bf16.msra.mxu1 %v2688_v56 }
 0x627   : > { %1577 = vmatprep.subr.bf16.mxu0 %v2695_v57  ;;  %1618 = vmatprep.subr.bf16.mxu1 %v2700_v58 }
 0x62a   : > { %1578 = vmatpush1.bf16.msra.mxu0 %v2707_v59  ;;  %1619 = vmatpush1.bf16.msra.mxu1 %v2712_v60 }
 0x62b   : > { %1579 = vmatprep.subr.bf16.mxu0 %v2719_v61  ;;  %1620 = vmatprep.subr.bf16.mxu1 %v2724_v62 }
 0x62e   : > { %1580 = vmatpush1.bf16.msra.mxu0 %v2731_v63  ;;  %1621 = vmatpush1.bf16.msra.mxu1 %v2736_v0 }
 0x62f   : > { %1581 = vmatprep.subr.bf16.mxu0 %v2743_v2  ;;  %1622 = vmatprep.subr.bf16.mxu1 %v2748_v3 }
 0x632   : > { %1582 = vmatpush1.bf16.msra.mxu0 %v2755_v4  ;;  %1623 = vmatpush1.bf16.msra.mxu1 %v2760_v5  ;;  %v1556_v5 = vrot.slane %v3011_v37, 7  ;;  %v2338_v37 = vld [vmem:[%s3246_s5 + $0x64] ss:$16 sps:$4 sm:$0xff]  }
 0x633   : > { %1583 = vmatprep.subr.bf16.mxu0 %v2767_v6  ;;  %1624 = vmatprep.subr.bf16.mxu1 %v2772_v7 }
 0x636   : > { %1584 = vmatpush1.bf16.msra.mxu0 %v2779_v8  ;;  %1625 = vmatpush1.bf16.msra.mxu1 %v2784_v9 }
 0x637   : > { %1689 = vmatprep.subr.bf16.mxu0 %v2326_v42  ;;  %1730 = vmatprep.subr.bf16.mxu1 %v2327_v43  ;;  %v2346_v42 = vld [vmem:[%s3246_s5 + $0xa4] ss:$16 sps:$4 sm:$0xff]   ;;  %v2347_v43 = vld [vmem:[%s3246_s5 + $0xac] ss:$16 sps:$4 sm:$0xff]  }
 0x6ec   : > { %v1481_v45 = vpop.f32.mrb[24].mxu0  ;;  %v1522_v46 = vpop.f32.mrb[32].mxu1 }
 0x6ed   : > { %v1533_v47 = vrot.slane %v1481_v45, 3  ;;  %v1535_v48 = vrot.slane %v1522_v46, 3  ;;  %v1483_v49 = vpop.f32.mrb[25].mxu0  ;;  %v1524_v50 = vpop.f32.mrb[33].mxu1  ;;  %v2348_v45 = vld [vmem:[%s3246_s5 + $0xa0] ss:$16 sps:$4 sm:$0xff]  }
 0x6ee   : > { %v1534_v51 = vrot.slane %v1483_v49, 3  ;;  %v1485_v52 = vpop.f32.mrb[26].mxu0  ;;  %v1526_v53 = vpop.f32.mrb[34].mxu1  ;;  %v1536_v59 = vrot.slane %v1524_v50, 3  ;;  %v2349_v46 = vld [vmem:[%s3246_s5 + $0xa8] ss:$16 sps:$4 sm:$0xff]  }
 0x6ef   : > { %v1541_v54 = vadd.f32 %v1533_v47, %v2831_v30  ;;  %v1486_v55 = vpop.f32.mrb[27].mxu0  ;;  %v1527_v56 = vpop.f32.mrb[35].mxu1  ;;  %v1543_v58 = vadd.f32 %v1535_v48, %v2835_v34  ;;  %v2350_v47 = vld [vmem:[%s3246_s5 + $0xc4] ss:$16 sps:$4 sm:$0xff]   ;;  %v2351_v48 = vld [vmem:[%s3246_s5 + $0xcc] ss:$16 sps:$4 sm:$0xff]  }
 0x6f0   : > { %v1542_v57 = vadd.f32 %v1534_v51, %v2833_v31  ;;  %v1544_v60 = vadd.f32 %v1536_v59, %v2840_v15  ;;  %v2352_v49 = vld [vmem:[%s3246_s5 + $0xc0] ss:$16 sps:$4 sm:$0xff]   ;;  %v2353_v50 = vld [vmem:[%s3246_s5 + $0xc8] ss:$16 sps:$4 sm:$0xff]  }
 0x6f1   : > { %2296 = vtanh.f32 %v1541_v54 }
 0x6f2   : > { %2298 = vtanh.f32 %v1542_v57 }
 0x6f3   : > { %2300 = vtanh.f32 %v1543_v58 }
 0x6f4   : > { %2302 = vtanh.f32 %v1544_v60 }
 0x6fb   : > { %v2297_v61 = vpop.eup %2296 }
 0x6fc   : > { %v1549_v62 = vmul.f32 0.5, %v2297_v61  ;;  %v2299_v63 = vpop.eup %2298 }
 0x6fd   : > { %v1551_v2 = vmul.f32 0.5, %v2299_v63  ;;  %v2301_v3 = vpop.eup %2300 }
 0x6fe   : > { %v1550_v0 = vadd.f32 0.5, %v1549_v62  ;;  %v2303_v16 = vpop.eup %2302 }
 0x6ff   : > { %v1552_v4 = vadd.f32 0.5, %v1551_v2  ;;  %v1553_v17 = vmul.f32 0.5, %v2303_v16 }
 0x700   : > { %v1559_v24 = vmul.f32 %v2301_v3, %v1550_v0 }
 0x701   : > { %v1558_v12 = vmul.f32 %v1556_v5, %v1552_v4  ;;  %v1554_v18 = vadd.f32 0.5, %v1553_v17 }
 0x703   : > { %v3057_v26 = vadd.f32 %v1559_v24, %v1558_v12 }
 0x705   : > { %2304 = vtanh.f32 %v3057_v26  ;;  %v1678_v12 = vrot.slane %v3057_v26, 7  ;;  %v2238_v26 = vld [vmem:[%s3248_s7] sm:$0xff]  }
 0x70f   : > { %v2305_v19 = vpop.eup %2304 }
 0x710   : > { %v1562_v27 = vmul.f32 %v2305_v19, %v1554_v18 }
 0x712   : > { %v1563_v28 = vpack.c.bf16 %v1562_v27, %v1562_v27 }
 0x714   : > { %v1565_v20 = vshrl.u32 %v1563_v28, 16 }
 0x716   : > { %v1567_v22 = vrot.slane %v1565_v20, 2 }
 0x718   : > { %1602 = vmatmul.mubr.bf16.vlgmr.msra.gmra.mrb[28].mxu0 %v1567_v22  ;;  %1643 = vmatmul.mubr.bf16.vlgmr.msra.gmra.mrb[36].mxu1 %v1567_v22 }
 0x719   : > { %1690 = vmatpush1.bf16.msra.mxu0 %v2328_v23  ;;  %1731 = vmatpush1.bf16.msra.mxu1 %v2329_v38 }
 0x71a   : > { %1691 = vmatprep.subr.bf16.mxu0 %v2330_v25  ;;  %1732 = vmatprep.subr.bf16.mxu1 %v2331_v21  ;;  %v2239_v25 = vld [vmem:[%s3248_s7 + $0x8] sm:$0xff]   ;;  %v2240_v21 = vld [vmem:[%s3248_s7 + $0x10] sm:$0xff]  }
 0x71b   : > { %1721 = vmatprep.mubr.bf16.mxu0 %v2420_v29  ;;  %1762 = vmatprep.mubr.bf16.mxu1 %v2420_v29  ;;  %v2336_v29 = vld [vmem:[%s3246_s5 + $0x40] ss:$16 sps:$4 sm:$0xff]  }
 0x71d   : > { %1692 = vmatpush1.bf16.msra.mxu0 %v2332_v32  ;;  %1733 = vmatpush1.bf16.msra.mxu1 %v2333_v13  ;;  %v2241_v32 = vld [vmem:[%s3248_s7 + $0x18] sm:$0xff]   ;;  %v2242_v13 = vld [vmem:[%s3248_s7 + $0x20] sm:$0xff]  }
 0x71e   : > { %1693 = vmatprep.subr.bf16.mxu0 %v2334_v33  ;;  %1734 = vmatprep.subr.bf16.mxu1 %v2335_v35  ;;  %v2243_v33 = vld [vmem:[%s3248_s7 + $0x28] sm:$0xff]   ;;  %v2244_v35 = vld [vmem:[%s3248_s7 + $0x30] sm:$0xff]  }
 0x721   : > { %1694 = vmatpush1.bf16.msra.mxu0 %v2336_v29  ;;  %1735 = vmatpush1.bf16.msra.mxu1 %v2337_v36  ;;  %v2245_v29 = vld [vmem:[%s3248_s7 + $0x38] sm:$0xff]  }
 0x722   : > { %1695 = vmatprep.subr.bf16.mxu0 %v2338_v37  ;;  %1736 = vmatprep.subr.bf16.mxu1 %v2339_v11 }
 0x725   : > { %1696 = vmatpush1.bf16.msra.mxu0 %v2340_v39  ;;  %1737 = vmatpush1.bf16.msra.mxu1 %v2341_v40 }
 0x726   : > { %1697 = vmatprep.subr.bf16.mxu0 %v2342_v41  ;;  %1738 = vmatprep.subr.bf16.mxu1 %v2343_v44 }
 0x729   : > { %1698 = vmatpush1.bf16.msra.mxu0 %v2344_v10  ;;  %1739 = vmatpush1.bf16.msra.mxu1 %v2345_v14 }
 0x72a   : > { %1699 = vmatprep.subr.bf16.mxu0 %v2346_v42  ;;  %1740 = vmatprep.subr.bf16.mxu1 %v2347_v43 }
 0x72d   : > { %1700 = vmatpush1.bf16.msra.mxu0 %v2348_v45  ;;  %1741 = vmatpush1.bf16.msra.mxu1 %v2349_v46 }
 0x72e   : > { %1701 = vmatprep.subr.bf16.mxu0 %v2350_v47  ;;  %1742 = vmatprep.subr.bf16.mxu1 %v2351_v48 }
 0x731   : > { %1702 = vmatpush1.bf16.msra.mxu0 %v2352_v49  ;;  %1743 = vmatpush1.bf16.msra.mxu1 %v2353_v50 }
 0x732   : > { %1703 = vmatprep.subr.bf16.mxu0 %v2767_v6  ;;  %1744 = vmatprep.subr.bf16.mxu1 %v2772_v7 }
 0x735   : > { %1704 = vmatpush1.bf16.msra.mxu0 %v2779_v8  ;;  %1745 = vmatpush1.bf16.msra.mxu1 %v2784_v9 }
 0x736   : > { %2104 = vmatprep.subr.bf16.mxu0 %v2418_v1 }
 0x7eb   : > { %v1603_v51 = vpop.f32.mrb[28].mxu0  ;;  %v1644_v52 = vpop.f32.mrb[36].mxu1 }
 0x7ec   : > { %v1655_v53 = vrot.slane %v1603_v51, 2  ;;  %v1657_v54 = vrot.slane %v1644_v52, 2  ;;  %v1605_v55 = vpop.f32.mrb[29].mxu0  ;;  %v1646_v56 = vpop.f32.mrb[37].mxu1 }
 0x7ed   : > { %v1656_v57 = vrot.slane %v1605_v55, 2  ;;  %v1607_v58 = vpop.f32.mrb[30].mxu0  ;;  %v1648_v59 = vpop.f32.mrb[38].mxu1  ;;  %v1658_v9 = vrot.slane %v1646_v56, 2 }
 0x7ee   : > { %v1663_v60 = vadd.f32 %v1655_v53, %v2831_v30  ;;  %v1608_v6 = vpop.f32.mrb[31].mxu0  ;;  %v1649_v61 = vpop.f32.mrb[39].mxu1  ;;  %v1665_v8 = vadd.f32 %v1657_v54, %v2835_v34 }
 0x7ef   : > { %v1664_v7 = vadd.f32 %v1656_v57, %v2833_v31  ;;  %v1666_v62 = vadd.f32 %v1658_v9, %v2840_v15 }
 0x7f0   : > { %2306 = vtanh.f32 %v1663_v60 }
 0x7f1   : > { %2308 = vtanh.f32 %v1664_v7 }
 0x7f2   : > { %2310 = vtanh.f32 %v1665_v8  ;;  %v1822_v8 = vld [vmem:[%s3249_s8] sm:$0x1] }
 0x7f3   : > { %2312 = vtanh.f32 %v1666_v62 }
 0x7fa   : > { %v2307_v63 = vpop.eup %2306 }
 0x7fb   : > { %v1671_v0 = vmul.f32 0.5, %v2307_v63  ;;  %v2309_v2 = vpop.eup %2308 }
 0x7fc   : > { %v1673_v4 = vmul.f32 0.5, %v2309_v2  ;;  %v2311_v5 = vpop.eup %2310 }
 0x7fd   : > { %v1672_v3 = vadd.f32 0.5, %v1671_v0  ;;  %v2313_v19 = vpop.eup %2312 }
 0x7fe   : > { %v1674_v24 = vadd.f32 0.5, %v1673_v4  ;;  %v1675_v27 = vmul.f32 0.5, %v2313_v19 }
 0x7ff   : > { %v1681_v16 = vmul.f32 %v2311_v5, %v1672_v3 }
 0x800   : > { %v1680_v17 = vmul.f32 %v1678_v12, %v1674_v24  ;;  %v1676_v28 = vadd.f32 0.5, %v1675_v27 }
 0x802   : > { %v3150_v18 = vadd.f32 %v1681_v16, %v1680_v17 }
 0x804   : > { %2314 = vtanh.f32 %v3150_v18  ;;  %v1798_v55 = vrot.slane %v3150_v18, 7 }
 0x80e   : > { %v2315_v20 = vpop.eup %2314 }
 0x80f   : > { %v1684_v22 = vmul.f32 %v2315_v20, %v1676_v28 }
 0x811   : > { %v1685_v23 = vpack.c.bf16 %v1684_v22, %v1684_v22 }
 0x813   : > { %v1687_v38 = vrot.slane %v1685_v23, 3 }
 0x815   : > { %1722 = vmatmul.mubr.bf16.vlgmr.msra.gmra.mrb[32].mxu0 %v1687_v38  ;;  %1763 = vmatmul.mubr.bf16.vlgmr.msra.gmra.mrb[40].mxu1 %v1687_v38 }
 0x816   : > { %2120 = vmatprep.mubr.msk.bf16.mxu0 %vm2419_vm0, %v2418_v1  ;;  %2105 = vmatpush3.bf16.msra.mxu0 %v2238_v26 }
 0x817   : > { %2106 = vmatprep.subr.bf16.mxu0 %v2418_v1 }
 0x81a   : > { %2107 = vmatpush3.bf16.msra.mxu0 %v2239_v25 }
 0x81b   : > { %2108 = vmatprep.subr.bf16.mxu0 %v2418_v1 }
 0x81e   : > { %2109 = vmatpush3.bf16.msra.mxu0 %v2240_v21 }
 0x81f   : > { %2110 = vmatprep.subr.bf16.mxu0 %v2418_v1 }
 0x822   : > { %2111 = vmatpush3.bf16.msra.mxu0 %v2241_v32 }
 0x823   : > { %2112 = vmatprep.subr.bf16.mxu0 %v2418_v1 }
 0x826   : > { %2113 = vmatpush3.bf16.msra.mxu0 %v2242_v13 }
 0x827   : > { %2114 = vmatprep.subr.bf16.mxu0 %v2418_v1 }
 0x82a   : > { %2115 = vmatpush3.bf16.msra.mxu0 %v2243_v33 }
 0x82b   : > { %2116 = vmatprep.subr.bf16.mxu0 %v2418_v1 }
 0x82e   : > { %2117 = vmatpush3.bf16.msra.mxu0 %v2244_v35 }
 0x82f   : > { %2118 = vmatprep.subr.bf16.mxu0 %v2418_v1 }
 0x832   : > { %2119 = vmatpush3.bf16.msra.mxu0 %v2245_v29 }
 0x8e8   : > { %v1723_v36 = vpop.f32.mrb[32].mxu0  ;;  %v1764_v37 = vpop.f32.mrb[40].mxu1 }
 0x8e9   : > { %v1775_v11 = vrot.slane %v1723_v36, 1  ;;  %v1777_v39 = vrot.slane %v1764_v37, 1  ;;  %v1725_v40 = vpop.f32.mrb[33].mxu0  ;;  %v1766_v41 = vpop.f32.mrb[41].mxu1 }
 0x8ea   : > { %v1776_v44 = vrot.slane %v1725_v40, 1  ;;  %v1727_v10 = vpop.f32.mrb[34].mxu0  ;;  %v1768_v14 = vpop.f32.mrb[42].mxu1  ;;  %v1778_v1 = vrot.slane %v1766_v41, 1 }
 0x8eb   : > { %v1783_v42 = vadd.f32 %v1775_v11, %v2831_v30  ;;  %v1728_v43 = vpop.f32.mrb[35].mxu0  ;;  %v1769_v45 = vpop.f32.mrb[43].mxu1  ;;  %v1785_v47 = vadd.f32 %v1777_v39, %v2835_v34 }
 0x8ec   : > { %v1784_v46 = vadd.f32 %v1776_v44, %v2833_v31  ;;  %v1786_v48 = vadd.f32 %v1778_v1, %v2840_v15 }
 0x8ed   : > { %2316 = vtanh.f32 %v1783_v42 }
 0x8ee   : > { %2318 = vtanh.f32 %v1784_v46 }
 0x8ef   : > { %2320 = vtanh.f32 %v1785_v47 }
 0x8f0   : > { %2322 = vtanh.f32 %v1786_v48 }
 0x8f7   : > { %v2317_v49 = vpop.eup %2316 }
 0x8f8   : > { %v1791_v50 = vmul.f32 0.5, %v2317_v49  ;;  %v2319_v51 = vpop.eup %2318 }
 0x8f9   : > { %v1793_v53 = vmul.f32 0.5, %v2319_v51  ;;  %v2321_v54 = vpop.eup %2320 }
 0x8fa   : > { %v1792_v52 = vadd.f32 0.5, %v1791_v50  ;;  %v2323_v57 = vpop.eup %2322 }
 0x8fb   : > { %v1794_v30 = vadd.f32 0.5, %v1793_v53  ;;  %v1795_v58 = vmul.f32 0.5, %v2323_v57 }
 0x8fc   : > { %v1801_v31 = vmul.f32 %v2321_v54, %v1792_v52 }
 0x8fd   : > { %v1800_v56 = vmul.f32 %v1798_v55, %v1794_v30  ;;  %v1796_v59 = vadd.f32 0.5, %v1795_v58 }
 0x8ff   : > { %v1802_v34 = vadd.f32 %v1801_v31, %v1800_v56 }
 0x901   : > { %2324 = vtanh.f32 %v1802_v34 }
 0x90b   : > { %v2325_v15 = vpop.eup %2324 }
 0x90c   : > { %v1804_v60 = vmul.f32 %v2325_v15, %v1796_v59 }
 0x90e   : > { %v1805_v6 = vpack.c.bf16 %v1804_v60, %v1804_v60 }
 0x910   : > { %v1824_v61 = vshrl.u32 %v1805_v6, 16 }
 0x912   : > { %v1826_v7 = vrot.slane %v1824_v61, 3 }
 0x914   : > { %2121 = vmatmul.mubr.bf16.vlgmr.msra.gmra.mrb[36].mxu0 %v1826_v7 }
 0x9e7   : > { %v1910_v9 = vpop.f32.mrb[36].mxu0 }
 0x9e8   : > { %v1911_v62 = vadd.f32 %v1910_v9, %v1822_v8  ;;  %v2122_v63 = vpop.f32.mrb[37].mxu0 }
 0x9e9   : > { %v1913_v0 = vpop.f32.mrb[38].mxu0 }
 0x9ea   : > { %v2123_v2 = vpop.f32.mrb[39].mxu0  ;;  %1917 = vst.msk [vmem:[%s322_s26] sm:$0x1] %vm1916_vm4, %v1911_v62 }
 0x9eb   : > { %2367 = shalt.err (!%p2364_p3)
}
 0x9ec   : > { %s2368_s22 = scalar_lea.hbm %s3199_s14, 16  ;;  %s2372_s26 = scalar_lea.hbm %s3250_s9, 32 }
 0x9ed   : > { %p2369_p4 = scmp.ne.s32.totalorder %s3199_s14, %s2368_s22  ;;  %p2373_p9 = scmp.lt.u32.totalorder %s3199_s14, %s3250_s9 }
 0x9ee   : > { %p2374_p10 = scmp.lt.u32.totalorder %s2372_s26, %s2368_s22  ;;  %p2376_p12 = scmp.lt.u32.totalorder %s2368_s22, %s3199_s14 }
 0x9ef   : > { %p2370_p7 = pnand %p2369_p4, %p2510_p5 }
 0x9f0   : > { %p2375_p11 = por %p2374_p10, %p2373_p9 }
 0x9f1   : > { %p2371_p8 = pneg %p2370_p7 }
 0x9f2   : > { %p2377_p13 = por %p2376_p12, %p2375_p11 }
 0x9f4   : > { %p2378_p0 = pnand %p2377_p13, %p2371_p8 }
 0x9f6   : > { %2381 = shalt.err (!%p2378_p0)
}
 0x9f7   : > { %2124 = dma.vmem_to_hbm [thread:$0]  (%p2510_p5), %s3201_s27, 16, %s3199_s14, %s1919_s13  }
 0x9f8 PF: > { %p2130_p1 = scmp.ge.s32.totalorder %s2416_s12, 2  ;;  %s1943_s16 = sand.u32 1, %s2404_s30  }
 0x9f9   : > { %s1944_s17 = scalar_lea.sflag [#allocation3], %s1943_s16 }
 0x9fa   : > { %p2127_p2 = pnand %p2130_p1, %p2514_p6 }
 0x9fc   : > { %2399 = dma.done.wait (!%p2127_p2), %s1944_s17, 16  }
 0x9fd   : > { %2401 = vsyncadd (!%p2127_p2), %s1944_s17, 4294967280  ;;  %p19_p3 = scmp.ge.s32.totalorder %s2497_s15, 4   ;;  %s3253_s30 = smov %s2408_s10 }
 0x9fe   : > { %s3254_s10 = smov %s2412_s11  ;;  %s3255_s11 = smov %s2508_s18 }
 0x9ff   : > { %s3256_s12 = smov %s2497_s15  ;;  %21 = sbr.rel (!%p19_p3) target bundleno = 3 (0x3), region = 91 }
 0xa06   :  { %1948 = vsyncpa [#allocation3], 1 }
 0xa07   :  { %1950 = vsyncpa [#allocation3 + $0x1], 1 }

</bundles_post_ra>
